<compile_context>
chip_gen: v7x
topology: tpu7x:2x2x1
jax: 0.10.0
libtpu: 0.0.40
codegen_flags: <defaults>
</compile_context>

<pallas_src>
import numpy as np
import jax
import jax.numpy as jnp
from jax.experimental import pallas as pl
from jax.experimental.pallas import tpu as pltpu

P = 8               # inplane (module default 32; small here for the test)
KERN_LENGTH = 9     # kernLength (default)
KERN_DIFF = 2       # kernDiff (default)

MXU_DTYPE = jnp.bfloat16            # matmul operand dtype (f32 accumulation)
ROW_TILE_BYTES = 512 * 1024         # per-step input-block VMEM budget
VMEM_LIMIT_BYTES = 32 * 1024 * 1024

# Per-ResBlock config derived from EEGResNet18.__init__ with (inplane=P,
# kernLength=9, kernDiff=2):
#   (cin, cout, k1, pad1, axis1, k2, pad2, axis2, stride, has_downsample_conv)
BLOCK_CFG = [
    (P,     P,     9, 4, 'w', 7, 3, 'w', 2, True),   # stage1 b1 (force_conv_skip)
    (P,     P,     9, 4, 'w', 7, 3, 'w', 1, False),  # stage1 b2
    (P,     2 * P, 7, 3, 'w', 5, 2, 'w', 2, True),   # stage2 b1
    (2 * P, 2 * P, 7, 3, 'w', 5, 2, 'w', 1, False),  # stage2 b2
    (2 * P, 4 * P, 5, 2, 'w', 5, 2, 'h', 2, True),   # stage3 b1 (mix)
    (4 * P, 4 * P, 5, 2, 'w', 5, 2, 'h', 1, False),  # stage3 b2 (mix)
    (4 * P, 8 * P, 5, 2, 'h', 3, 1, 'h', 1, True),   # stage4 b1
    (8 * P, 8 * P, 5, 2, 'h', 3, 1, 'h', 1, False),  # stage4 b2
]


# ---------------------------------------------------------------------------
# In-kernel helpers
# ---------------------------------------------------------------------------
def _pad_axis1(x, pad_l, pad_r):
    """Zero-pad along axis 1 inside the kernel (VMEM only, no HBM pass)."""
    if pad_l == 0 and pad_r == 0:
        return x
    parts = []
    if pad_l:
        parts.append(jnp.zeros(x.shape[:1] + (pad_l,) + x.shape[2:], x.dtype))
    parts.append(x)
    if pad_r:
        parts.append(jnp.zeros(x.shape[:1] + (pad_r,) + x.shape[2:], x.dtype))
    return jnp.concatenate(parts, axis=1)


def _conv_axis1(x, w_ref, b_ref, k, pad_l, pad_r, relu):
    """Stride-1 conv of x = (lead, L, ..., Cin) along axis 1 (channels last) as a
    single im2col matmul (M, K*Cin) @ (K*Cin, Cout). bf16 operands, f32 epilogue."""
    cin = x.shape[-1]
    cout = w_ref.shape[-1]
    xp = _pad_axis1(x, pad_l, pad_r)
    lout = xp.shape[1] - k + 1
    out_shape = x.shape[:1] + (lout,) + x.shape[2:-1] + (cout,)
    if cin == 1:
        # Contraction dim 1 would waste the MXU: K broadcast FMAs on the VPU.
        w = w_ref[...].astype(jnp.float32)                        # (K, Cout)
        y = jnp.zeros(out_shape, jnp.float32)
        for t in range(k):
            xt = xp[:, t:t + lout].astype(MXU_DTYPE).astype(jnp.float32)
            y = y + xt * w[t:t + 1]
        y = y + b_ref[...]
    else:
        cols = (jnp.concatenate([xp[:, t:t + lout] for t in range(k)], axis=-1)
                if k > 1 else xp)
        y = jnp.dot(cols.reshape(-1, k * cin).astype(MXU_DTYPE),
                    w_ref[...].astype(MXU_DTYPE),
                    preferred_element_type=jnp.float32)
        y = (y + b_ref[...]).reshape(out_shape)
    if relu:
        y = jnp.maximum(y, 0.0)
    return y


def _skip_conv(x, dw_ref, db_ref):
    """1x1 (phase-packed) skip conv: one matmul over the channel dim."""
    cds = dw_ref.shape[-1]
    r = jnp.dot(x.reshape(-1, x.shape[-1]).astype(MXU_DTYPE), dw_ref[...],
                preferred_element_type=jnp.float32) + db_ref[...]
    return r.reshape(x.shape[:-1] + (cds,))


# ---------------------------------------------------------------------------
# Kernel builders
# ---------------------------------------------------------------------------
def _make_resblock_kernel(k1, p1l, p1r, k2, p2, has_ds, has_head):
    """Fused ResBlock: conv1+BN+ReLU, conv2+BN, residual add, ReLU, all on
    VMEM-resident intermediates; optional fused downsample conv and fused
    global-average-pool + linear head."""
    def kernel(*refs):
        x_ref, w1_ref, b1_ref, w2_ref, b2_ref = refs[:5]
        i = 5
        if has_ds:
            dw_ref, db_ref = refs[i], refs[i + 1]
            i += 2
        if has_head:
            hw_ref, hb_ref = refs[i], refs[i + 1]
            i += 2
        o_ref = refs[i]

        x = x_ref[...]
        h = _conv_axis1(x, w1_ref, b1_ref, k1, p1l, p1r, relu=True)
        h = _conv_axis1(h, w2_ref, b2_ref, k2, p2, p2, relu=False)
        r = _skip_conv(x, dw_ref, db_ref) if has_ds else x
        out = jnp.maximum(h + r, 0.0)
        if has_head:                      # fused AdaptiveAvgPool2d((1,1)) + Linear
            pooled = jnp.mean(out, axis=tuple(range(1, out.ndim - 1)))
            o_ref[...] = (jnp.dot(pooled, hw_ref[...],
                                  preferred_element_type=jnp.float32)
                          + hb_ref[...]).astype(o_ref.dtype)
        else:
            o_ref[...] = out.astype(o_ref.dtype)
    return kernel


def _make_conv_kernel(k, p_l, p_r, relu, has_res, has_ds):
    """Single conv (+bias)(+residual add)(+ReLU), optional 1x1 skip-conv output."""
    def kernel(*refs):
        x_ref, w_ref, b_ref = refs[:3]
        i = 3
        if has_res:
            r_ref = refs[i]
            i += 1
        if has_ds:
            dw_ref, db_ref = refs[i], refs[i + 1]
            i += 2
        o_ref = refs[i]

        x = x_ref[...]
        y = _conv_axis1(x, w_ref, b_ref, k, p_l, p_r, relu=False)
        if has_res:
            y = y + r_ref[...]
        if relu:
            y = jnp.maximum(y, 0.0)
        o_ref[...] = y.astype(o_ref.dtype)
        if has_ds:
            ds_ref = refs[i + 1]
            ds_ref[...] = _skip_conv(x, dw_ref, db_ref).astype(ds_ref.dtype)
    return kernel


# ---------------------------------------------------------------------------
# pallas_call wrappers
# ---------------------------------------------------------------------------
def _lead_map(nd):
    return lambda i: (i,) + (0,) * (nd - 1)


def _pick_tile(shape, dtype_bytes=4, budget=ROW_TILE_BYTES):
    """Rows of the leading dim per grid step, accounting for (8,128) padding."""
    lane = -(-shape[-1] // 128) * 128
    sub = -(-shape[-2] // 8) * 8
    per = dtype_bytes * lane * sub
    for d in shape[1:-2]:
        per *= d
    return int(max(1, min(shape[0], budget // per)))


def _compiler_params():
    return pltpu.CompilerParams(dimension_semantics=("parallel",),
                                vmem_limit_bytes=VMEM_LIMIT_BYTES)


def conv_call(x, w, b, k, p_l, p_r, relu, residual=None, ds=None):
    """Pipelined conv along axis 1 of x (channels last); leading dim tiled."""
    nd = x.ndim
    lead, length = x.shape[0], x.shape[1]
    cout = w.shape[-1]
    lout = length + p_l + p_r - k + 1
    tile = _pick_tile(x.shape)
    grid = (pl.cdiv(lead, tile),)
    lead_map = _lead_map(nd)

    in_specs = [pl.BlockSpec((tile,) + x.shape[1:], lead_map),
                pl.BlockSpec(w.shape, lambda i: (0, 0)),
                pl.BlockSpec(b.shape, lambda i: (0, 0))]
    args = [x, w, b]
    if residual is not None:
        in_specs.append(pl.BlockSpec((tile,) + residual.shape[1:], lead_map))
        args.append(residual)
    if ds is not None:
        dw, db = ds
        in_specs += [pl.BlockSpec(dw.shape, lambda i: (0, 0)),
                     pl.BlockSpec(db.shape, lambda i: (0, 0))]
        args += [dw, db]

    main_shape = (lead, lout) + x.shape[2:-1] + (cout,)
    out_shapes = [jax.ShapeDtypeStruct(main_shape, jnp.float32)]
    out_specs = [pl.BlockSpec((tile,) + main_shape[1:], lead_map)]
    if ds is not None:
        ds_shape = (lead,) + x.shape[1:-1] + (ds[0].shape[-1],)
        out_shapes.append(jax.ShapeDtypeStruct(ds_shape, jnp.float32))
        out_specs.append(pl.BlockSpec((tile,) + ds_shape[1:], lead_map))

    outs = pl.pallas_call(
        _make_conv_kernel(k, p_l, p_r, relu, residual is not None, ds is not None),
        out_shape=tuple(out_shapes), grid=grid,
        in_specs=in_specs, out_specs=tuple(out_specs),
        compiler_params=_compiler_params(),
    )(*args)
    return outs if ds is not None else outs[0]


def resblock_call(x, pb):
    """One pallas_call for a whole same-axis ResBlock (optionally + head)."""
    nd = x.ndim
    lead = x.shape[0]
    cout = pb['cout']
    l1 = x.shape[1] + pb['p1l'] + pb['p1r'] - pb['k1'] + 1
    has_ds = 'dw' in pb
    head = pb.get('head')
    tile = _pick_tile(x.shape)
    if head is not None and tile < lead:
        tile = min(lead, max(8, (tile // 8) * 8))   # 2-D head out: 8-align sublanes
    grid = (pl.cdiv(lead, tile),)
    lead_map = _lead_map(nd)

    in_specs = [pl.BlockSpec((tile,) + x.shape[1:], lead_map)]
    args = [x]
    for wk, bk in (('w1', 'b1'), ('w2', 'b2')):
        in_specs += [pl.BlockSpec(pb[wk].shape, lambda i: (0, 0)),
                     pl.BlockSpec(pb[bk].shape, lambda i: (0, 0))]
        args += [pb[wk], pb[bk]]
    if has_ds:
        in_specs += [pl.BlockSpec(pb['dw'].shape, lambda i: (0, 0)),
                     pl.BlockSpec(pb['db'].shape, lambda i: (0, 0))]
        args += [pb['dw'], pb['db']]
    if head is not None:
        hw, hb = head
        in_specs += [pl.BlockSpec(hw.shape, lambda i: (0, 0)),
                     pl.BlockSpec(hb.shape, lambda i: (0, 0))]
        args += [hw, hb]
        out_shape = jax.ShapeDtypeStruct((lead, hw.shape[-1]), jnp.float32)
        out_spec = pl.BlockSpec((tile, hw.shape[-1]), lambda i: (i, 0))
    else:
        oshape = (lead, l1) + x.shape[2:-1] + (cout,)
        out_shape = jax.ShapeDtypeStruct(oshape, jnp.float32)
        out_spec = pl.BlockSpec((tile,) + oshape[1:], lead_map)

    return pl.pallas_call(
        _make_resblock_kernel(pb['k1'], pb['p1l'], pb['p1r'], pb['k2'], pb['p2'],
                              has_ds, head is not None),
        out_shape=out_shape, grid=grid,
        in_specs=in_specs, out_specs=out_spec,
        compiler_params=_compiler_params(),
    )(*args)


# ---------------------------------------------------------------------------
# Model glue (free reshapes only)
# ---------------------------------------------------------------------------
def apply_block(h, pb):
    b, hh, ww, c = h.shape
    s = pb['stride']

    def to_rows(a):
        # stride-2 convs: free even/odd phase packing (W -> W/2, C -> 2C)
        if s == 2:
            return a.reshape(b * hh, ww // 2, 2 * c)
        return a.reshape(b * hh, ww, c)

    if not pb['mix']:
        if pb['axis1'] == 'w':
            out = resblock_call(to_rows(h), pb)
            return out.reshape(b, hh, out.shape[1], pb['cout'])
        return resblock_call(h, pb)        # 'h'-axis block: 4-D NHWC blocks

    # mix block (stage 3): conv1(+downsample) along W, conv2+residual+relu along H
    xr = to_rows(h)
    if pb['down']:
        h1, res = conv_call(xr, pb['w1'], pb['b1'], pb['k1'], pb['p1l'], pb['p1r'],
                            relu=True, ds=(pb['dw'], pb['db']))
        res = res.reshape(b, hh, res.shape[1], pb['cout'])
    else:
        h1 = conv_call(xr, pb['w1'], pb['b1'], pb['k1'], pb['p1l'], pb['p1r'],
                       relu=True)
        res = h                            # identity skip
    h1 = h1.reshape(b, hh, h1.shape[1], pb['cout'])
    return conv_call(h1, pb['w2'], pb['b2'], pb['k2'], pb['p2'], pb['p2'],
                     relu=True, residual=res)


def forward_pallas(x, kparams):
    b, chans, samples = x.shape
    h = conv_call(x.reshape(b * chans, samples, 1), kparams['pre_w'],
                  kparams['pre_b'], KERN_LENGTH, KERN_LENGTH // 2,
                  KERN_LENGTH // 2, relu=True)
    h = h.reshape(b, chans, samples, P)
    for pb in kparams['blocks']:
        h = apply_block(h, pb)
    return h                               # (B, nb_classes): head fused into last block


# ---------------------------------------------------------------------------
# Host-side weight preparation (stack taps / phase-pack strided convs)
# ---------------------------------------------------------------------------
def _pack_stride2(w, pad, length):
    """Rewrite a stride-2 conv (kernel K, symmetric pad) over an even axis of
    `length` as a stride-1 conv over the phase-packed axis (length/2 positions,
    2*Cin channels).  Returns (stacked weight (Kp*2Cin, Cout), Kp, pad_l, pad_r)."""
    k, cin, cout = w.shape
    assert length % 2 == 0, "phase packing needs an even conv-axis length"
    lout = (length + 2 * pad - k) // 2 + 1
    offs = [(t - pad) // 2 for t in range(k)]
    o_min, o_max = min(offs), max(offs)
    kp = o_max - o_min + 1
    pad_l = -o_min
    pad_r = lout + o_max - length // 2
    assert pad_l >= 0 and pad_r >= 0
    wp = np.zeros((kp, 2 * cin, cout), np.float32)
    w = np.asarray(w, np.float32)
    for t in range(k):
        ph = (t - pad) % 2
        wp[offs[t] - o_min, ph * cin:(ph + 1) * cin, :] = w[t]
    return wp.reshape(kp * 2 * cin, cout), kp, pad_l, pad_r


def prepare_kernel_params(params, samples):
    def wcast(a):
        return jnp.asarray(np.asarray(a, np.float32)).astype(MXU_DTYPE)

    def bcast(a):
        return jnp.asarray(a, jnp.float32).reshape(1, -1)

    wp, bp = params['pre']
    kparams = {'pre_w': wcast(np.asarray(wp).reshape(KERN_LENGTH, P)),
               'pre_b': bcast(bp)}
    blocks = []
    w_cur = samples
    for blk, cfg in zip(params['blocks'], BLOCK_CFG):
        cin, cout, k1, p1, a1, k2, p2, a2, stride, down = cfg
        if a1 == 'h':
            assert stride == 1
        pb = {'axis1': a1, 'mix': a1 != a2, 'stride': stride, 'down': down,
              'cout': cout, 'k2': k2, 'p2': p2}
        w1 = np.asarray(blk['w1'], np.float32)
        if stride == 2:
            w1s, k1e, p1l, p1r = _pack_stride2(w1, p1, w_cur)
        else:
            w1s, k1e, p1l, p1r = w1.reshape(k1 * cin, cout), k1, p1, p1
        pb.update(w1=wcast(w1s), b1=bcast(blk['b1']), k1=k1e, p1l=p1l, p1r=p1r)
        w2 = np.asarray(blk['w2'], np.float32)
        pb.update(w2=wcast(w2.reshape(k2 * cout, cout)), b2=bcast(blk['b2']))
        if down:
            dw = np.asarray(blk['dw'], np.float32)
            if stride == 2:
                dws, kd, dl, dr = _pack_stride2(dw, 0, w_cur)
                assert kd == 1 and dl == 0 and dr == 0
            else:
                dws = dw.reshape(cin, cout)
            pb.update(dw=wcast(dws), db=bcast(blk['db']))
        if stride == 2:
            w_cur //= 2
        blocks.append(pb)
    # Fuse global average pool + linear head into the last block's kernel.
    blocks[-1]['head'] = (jnp.asarray(params['head_w'], jnp.float32),
                          bcast(params['head_b']))
    kparams['blocks'] = blocks
    return kparams


# ---------------------------------------------------------------------------
# Deterministic synthetic parameters (BN folded into conv)
# ---------------------------------------------------------------------------
def init_conv_bn(key, k, cin, cout, conv_bias=False, eps=1e-5):
    k1, k2, k3, k4, k5, k6 = jax.random.split(key, 6)
    w = jax.random.normal(k1, (k, cin, cout), jnp.float32) / np.sqrt(k * cin)
    cb = (jax.random.normal(k2, (cout,), jnp.float32) * 0.1
          if conv_bias else jnp.zeros((cout,), jnp.float32))
    gamma = jax.random.uniform(k3, (cout,), jnp.float32, minval=0.5, maxval=1.5)
    beta = jax.random.normal(k4, (cout,), jnp.float32) * 0.1
    mean = jax.random.normal(k5, (cout,), jnp.float32) * 0.1
    var = jax.random.uniform(k6, (cout,), jnp.float32, minval=0.5, maxval=1.5)
    s = gamma / jnp.sqrt(var + eps)
    return w * s[None, None, :], (cb - mean) * s + beta


def init_params(key, nb_classes):
    keys = iter(jax.random.split(key, 4 * len(BLOCK_CFG) + 4))
    params = {'pre': init_conv_bn(next(keys), KERN_LENGTH, 1, P, conv_bias=True)}
    blocks = []
    for (cin, cout, k1, _, _, k2, _, _, _, down) in BLOCK_CFG:
        blk = {}
        blk['w1'], blk['b1'] = init_conv_bn(next(keys), k1, cin, cout)
        blk['w2'], blk['b2'] = init_conv_bn(next(keys), k2, cout, cout)
        if down:
            blk['dw'], blk['db'] = init_conv_bn(next(keys), 1, cin, cout)
        blocks.append(blk)
    params['blocks'] = blocks
    kh1, kh2 = jax.random.split(next(keys))
    c = 8 * P
    n_head = 1 if nb_classes <= 2 else nb_classes
    params['head_w'] = jax.random.normal(kh1, (c, n_head), jnp.float32) / np.sqrt(c)
    params['head_b'] = jax.random.normal(kh2, (n_head,), jnp.float32) * 0.1
    return params


# ---------------------------------------------------------------------------
# Pure-JAX reference (mirrors the kernels' bf16-operand / f32-accumulate math)
# ---------------------------------------------------------------------------
def ref_conv(x, w, b, *, axis, stride=1, pad=0, residual=None, relu=True):
    if axis == 'w':
        wk = w[None]                       # HWIO = (1, K, Cin, Cout)
        strides, padding = (1, stride), ((0, 0), (pad, pad))
    else:
        wk = w[:, None]                    # HWIO = (K, 1, Cin, Cout)
        strides, padding = (stride, 1), ((pad, pad), (0, 0))
    out = jax.lax.conv_general_dilated(
        x.astype(MXU_DTYPE), wk.astype(MXU_DTYPE),
        window_strides=strides, padding=padding,
        dimension_numbers=('NHWC', 'HWIO', 'NHWC'),
        preferred_element_type=jnp.float32)
    out = out + b[None, None, None, :]
    if residual is not None:
        out = out + residual
    if relu:
        out = jnp.maximum(out, 0.0)
    return out


def forward_ref(x, params):
    h = x[:, :, :, None]
    wp, bp = params['pre']
    h = ref_conv(h, wp, bp, axis='w', pad=KERN_LENGTH // 2)
    for blk, cfg in zip(params['blocks'], BLOCK_CFG):
        (_, _, k1, p1, a1, k2, p2, a2, stride, down) = cfg
        if down:
            residual = ref_conv(h, blk['dw'], blk['db'], axis='w', stride=stride,
                                pad=0, relu=False)
        else:
            residual = h
        out = ref_conv(h, blk['w1'], blk['b1'], axis=a1, stride=stride, pad=p1)
        h = ref_conv(out, blk['w2'], blk['b2'], axis=a2, pad=p2, residual=residual)
    pooled = h.mean(axis=(1, 2))
    return pooled @ params['head_w'] + params['head_b'][None, :]


# ---------------------------------------------------------------------------
if __name__ == "__main__":
    B, Chans, Samples = 2, 4, 16
    nb_classes = 4

    key = jax.random.PRNGKey(0)
    kx, kparam = jax.random.split(key)
    x = jax.random.normal(kx, (B, Chans, Samples), jnp.float32)
    params = init_params(kparam, nb_classes)
    kparams = prepare_kernel_params(params, Samples)

    out = jax.block_until_ready(forward_pallas(x, kparams))
    ref = jax.block_until_ready(forward_ref(x, params))

    n_head = 1 if nb_classes <= 2 else nb_classes
    assert out.shape == (B, n_head), out.shape
    np.testing.assert_allclose(np.asarray(out), np.asarray(ref),
                               rtol=1e-2, atol=1e-2)
    print("KERNEL_OK")
</pallas_src>

<mosaic_0001>
module attributes {stable_mosaic.version = 11 : i64} {
  func.func @kernel(%arg0: i32, %arg1: memref<8x16x1xf32, #tpu.memory_space<vmem>>, %arg2: memref<9x8xbf16, #tpu.memory_space<vmem>>, %arg3: memref<1x8xf32, #tpu.memory_space<vmem>>, %arg4: memref<8x16x8xf32, #tpu.memory_space<vmem>>) attributes {dimension_semantics = [#tpu.dimension_semantics<parallel>], iteration_bounds = array<i64: 1>, scalar_prefetch = 0 : i64, scratch_operands = 0 : i64, tpu.core_type = #tpu.core_type<tc>, window_params = [{transform_indices = @transform_0, window_bounds = array<i64: 8, 16, 1>}, {pipeline_mode = #tpu.pipeline_mode<synchronous>, transform_indices = @transform_1, window_bounds = array<i64: 9, 8>}, {pipeline_mode = #tpu.pipeline_mode<synchronous>, transform_indices = @transform_2, window_bounds = array<i64: 1, 8>}, {transform_indices = @transform_3, window_bounds = array<i64: 8, 16, 8>}]} {
    %c0 = arith.constant 0 : index
    %c0_0 = arith.constant 0 : index
    %c0_1 = arith.constant 0 : index
    %0 = vector.load %arg1[%c0, %c0_0, %c0_1] : memref<8x16x1xf32, #tpu.memory_space<vmem>>, vector<8x16x1xf32>
    %cst = arith.constant 0.000000e+00 : f32
    %1 = vector.broadcast %cst : f32 to vector<8x4x1xf32>
    %cst_2 = arith.constant 0.000000e+00 : f32
    %2 = vector.broadcast %cst_2 : f32 to vector<8x4x1xf32>
    %3 = tpu.concatenate %1, %0, %2 in 1 : vector<8x4x1xf32>, vector<8x16x1xf32>, vector<8x4x1xf32> -> vector<8x24x1xf32>
    %c0_3 = arith.constant 0 : index
    %c0_4 = arith.constant 0 : index
    %4 = vector.load %arg2[%c0_3, %c0_4] : memref<9x8xbf16, #tpu.memory_space<vmem>>, vector<9x8xbf16>
    %5 = arith.extf %4 : vector<9x8xbf16> to vector<9x8xf32>
    %cst_5 = arith.constant 0.000000e+00 : f32
    %6 = vector.broadcast %cst_5 : f32 to vector<8x16x8xf32>
    %7 = vector.extract_strided_slice %3 {offsets = [0, 0, 0], sizes = [8, 16, 1], strides = [1, 1, 1]} : vector<8x24x1xf32> to vector<8x16x1xf32>
    %8 = arith.truncf %7 : vector<8x16x1xf32> to vector<8x16x1xbf16>
    %9 = arith.extf %8 : vector<8x16x1xbf16> to vector<8x16x1xf32>
    %10 = vector.extract_strided_slice %5 {offsets = [0, 0], sizes = [1, 8], strides = [1, 1]} : vector<9x8xf32> to vector<1x8xf32>
    %11 = vector.shape_cast %10 : vector<1x8xf32> to vector<1x1x8xf32>
    %12 = vector.broadcast %9 : vector<8x16x1xf32> to vector<8x16x8xf32>
    %13 = vector.broadcast %11 : vector<1x1x8xf32> to vector<8x16x8xf32>
    %14 = arith.mulf %12, %13 : vector<8x16x8xf32>
    %15 = arith.addf %6, %14 : vector<8x16x8xf32>
    %16 = vector.extract_strided_slice %3 {offsets = [0, 1, 0], sizes = [8, 16, 1], strides = [1, 1, 1]} : vector<8x24x1xf32> to vector<8x16x1xf32>
    %17 = arith.truncf %16 : vector<8x16x1xf32> to vector<8x16x1xbf16>
    %18 = arith.extf %17 : vector<8x16x1xbf16> to vector<8x16x1xf32>
    %19 = vector.extract_strided_slice %5 {offsets = [1, 0], sizes = [1, 8], strides = [1, 1]} : vector<9x8xf32> to vector<1x8xf32>
    %20 = vector.shape_cast %19 : vector<1x8xf32> to vector<1x1x8xf32>
    %21 = vector.broadcast %18 : vector<8x16x1xf32> to vector<8x16x8xf32>
    %22 = vector.broadcast %20 : vector<1x1x8xf32> to vector<8x16x8xf32>
    %23 = arith.mulf %21, %22 : vector<8x16x8xf32>
    %24 = arith.addf %15, %23 : vector<8x16x8xf32>
    %25 = vector.extract_strided_slice %3 {offsets = [0, 2, 0], sizes = [8, 16, 1], strides = [1, 1, 1]} : vector<8x24x1xf32> to vector<8x16x1xf32>
    %26 = arith.truncf %25 : vector<8x16x1xf32> to vector<8x16x1xbf16>
    %27 = arith.extf %26 : vector<8x16x1xbf16> to vector<8x16x1xf32>
    %28 = vector.extract_strided_slice %5 {offsets = [2, 0], sizes = [1, 8], strides = [1, 1]} : vector<9x8xf32> to vector<1x8xf32>
    %29 = vector.shape_cast %28 : vector<1x8xf32> to vector<1x1x8xf32>
    %30 = vector.broadcast %27 : vector<8x16x1xf32> to vector<8x16x8xf32>
    %31 = vector.broadcast %29 : vector<1x1x8xf32> to vector<8x16x8xf32>
    %32 = arith.mulf %30, %31 : vector<8x16x8xf32>
    %33 = arith.addf %24, %32 : vector<8x16x8xf32>
    %34 = vector.extract_strided_slice %3 {offsets = [0, 3, 0], sizes = [8, 16, 1], strides = [1, 1, 1]} : vector<8x24x1xf32> to vector<8x16x1xf32>
    %35 = arith.truncf %34 : vector<8x16x1xf32> to vector<8x16x1xbf16>
    %36 = arith.extf %35 : vector<8x16x1xbf16> to vector<8x16x1xf32>
    %37 = vector.extract_strided_slice %5 {offsets = [3, 0], sizes = [1, 8], strides = [1, 1]} : vector<9x8xf32> to vector<1x8xf32>
    %38 = vector.shape_cast %37 : vector<1x8xf32> to vector<1x1x8xf32>
    %39 = vector.broadcast %36 : vector<8x16x1xf32> to vector<8x16x8xf32>
    %40 = vector.broadcast %38 : vector<1x1x8xf32> to vector<8x16x8xf32>
    %41 = arith.mulf %39, %40 : vector<8x16x8xf32>
    %42 = arith.addf %33, %41 : vector<8x16x8xf32>
    %43 = vector.extract_strided_slice %3 {offsets = [0, 4, 0], sizes = [8, 16, 1], strides = [1, 1, 1]} : vector<8x24x1xf32> to vector<8x16x1xf32>
    %44 = arith.truncf %43 : vector<8x16x1xf32> to vector<8x16x1xbf16>
    %45 = arith.extf %44 : vector<8x16x1xbf16> to vector<8x16x1xf32>
    %46 = vector.extract_strided_slice %5 {offsets = [4, 0], sizes = [1, 8], strides = [1, 1]} : vector<9x8xf32> to vector<1x8xf32>
    %47 = vector.shape_cast %46 : vector<1x8xf32> to vector<1x1x8xf32>
    %48 = vector.broadcast %45 : vector<8x16x1xf32> to vector<8x16x8xf32>
    %49 = vector.broadcast %47 : vector<1x1x8xf32> to vector<8x16x8xf32>
    %50 = arith.mulf %48, %49 : vector<8x16x8xf32>
    %51 = arith.addf %42, %50 : vector<8x16x8xf32>
    %52 = vector.extract_strided_slice %3 {offsets = [0, 5, 0], sizes = [8, 16, 1], strides = [1, 1, 1]} : vector<8x24x1xf32> to vector<8x16x1xf32>
    %53 = arith.truncf %52 : vector<8x16x1xf32> to vector<8x16x1xbf16>
    %54 = arith.extf %53 : vector<8x16x1xbf16> to vector<8x16x1xf32>
    %55 = vector.extract_strided_slice %5 {offsets = [5, 0], sizes = [1, 8], strides = [1, 1]} : vector<9x8xf32> to vector<1x8xf32>
    %56 = vector.shape_cast %55 : vector<1x8xf32> to vector<1x1x8xf32>
    %57 = vector.broadcast %54 : vector<8x16x1xf32> to vector<8x16x8xf32>
    %58 = vector.broadcast %56 : vector<1x1x8xf32> to vector<8x16x8xf32>
    %59 = arith.mulf %57, %58 : vector<8x16x8xf32>
    %60 = arith.addf %51, %59 : vector<8x16x8xf32>
    %61 = vector.extract_strided_slice %3 {offsets = [0, 6, 0], sizes = [8, 16, 1], strides = [1, 1, 1]} : vector<8x24x1xf32> to vector<8x16x1xf32>
    %62 = arith.truncf %61 : vector<8x16x1xf32> to vector<8x16x1xbf16>
    %63 = arith.extf %62 : vector<8x16x1xbf16> to vector<8x16x1xf32>
    %64 = vector.extract_strided_slice %5 {offsets = [6, 0], sizes = [1, 8], strides = [1, 1]} : vector<9x8xf32> to vector<1x8xf32>
    %65 = vector.shape_cast %64 : vector<1x8xf32> to vector<1x1x8xf32>
    %66 = vector.broadcast %63 : vector<8x16x1xf32> to vector<8x16x8xf32>
    %67 = vector.broadcast %65 : vector<1x1x8xf32> to vector<8x16x8xf32>
    %68 = arith.mulf %66, %67 : vector<8x16x8xf32>
    %69 = arith.addf %60, %68 : vector<8x16x8xf32>
    %70 = vector.extract_strided_slice %3 {offsets = [0, 7, 0], sizes = [8, 16, 1], strides = [1, 1, 1]} : vector<8x24x1xf32> to vector<8x16x1xf32>
    %71 = arith.truncf %70 : vector<8x16x1xf32> to vector<8x16x1xbf16>
    %72 = arith.extf %71 : vector<8x16x1xbf16> to vector<8x16x1xf32>
    %73 = vector.extract_strided_slice %5 {offsets = [7, 0], sizes = [1, 8], strides = [1, 1]} : vector<9x8xf32> to vector<1x8xf32>
    %74 = vector.shape_cast %73 : vector<1x8xf32> to vector<1x1x8xf32>
    %75 = vector.broadcast %72 : vector<8x16x1xf32> to vector<8x16x8xf32>
    %76 = vector.broadcast %74 : vector<1x1x8xf32> to vector<8x16x8xf32>
    %77 = arith.mulf %75, %76 : vector<8x16x8xf32>
    %78 = arith.addf %69, %77 : vector<8x16x8xf32>
    %79 = vector.extract_strided_slice %3 {offsets = [0, 8, 0], sizes = [8, 16, 1], strides = [1, 1, 1]} : vector<8x24x1xf32> to vector<8x16x1xf32>
    %80 = arith.truncf %79 : vector<8x16x1xf32> to vector<8x16x1xbf16>
    %81 = arith.extf %80 : vector<8x16x1xbf16> to vector<8x16x1xf32>
    %82 = vector.extract_strided_slice %5 {offsets = [8, 0], sizes = [1, 8], strides = [1, 1]} : vector<9x8xf32> to vector<1x8xf32>
    %83 = vector.shape_cast %82 : vector<1x8xf32> to vector<1x1x8xf32>
    %84 = vector.broadcast %81 : vector<8x16x1xf32> to vector<8x16x8xf32>
    %85 = vector.broadcast %83 : vector<1x1x8xf32> to vector<8x16x8xf32>
    %86 = arith.mulf %84, %85 : vector<8x16x8xf32>
    %87 = arith.addf %78, %86 : vector<8x16x8xf32>
    %c0_6 = arith.constant 0 : index
    %c0_7 = arith.constant 0 : index
    %88 = vector.load %arg3[%c0_6, %c0_7] : memref<1x8xf32, #tpu.memory_space<vmem>>, vector<1x8xf32>
    %89 = vector.shape_cast %88 : vector<1x8xf32> to vector<1x1x8xf32>
    %90 = vector.broadcast %89 : vector<1x1x8xf32> to vector<8x16x8xf32>
    %91 = arith.addf %87, %90 : vector<8x16x8xf32>
    %cst_8 = arith.constant 0.000000e+00 : f32
    %92 = vector.broadcast %cst_8 : f32 to vector<8x16x8xf32>
    %93 = arith.maximumf %91, %92 : vector<8x16x8xf32>
    %c0_9 = arith.constant 0 : index
    %c0_10 = arith.constant 0 : index
    %c0_11 = arith.constant 0 : index
    %94 = vector.load %arg4[%c0_9, %c0_10, %c0_11] : memref<8x16x8xf32, #tpu.memory_space<vmem>>, vector<8x16x8xf32>
    tpu.vector_store %arg4[%c0_9, %c0_10, %c0_11], %93 {strides = array<i32>} : memref<8x16x8xf32, #tpu.memory_space<vmem>>, vector<8x16x8xf32>,
    return
  }
  func.func @transform_0(%arg0: i32) -> (i32, i32, i32) {
    %c0_i32 = arith.constant 0 : i32
    %c0_i32_0 = arith.constant 0 : i32
    %c0_i32_1 = arith.constant 0 : i32
    return %arg0, %c0_i32, %c0_i32_0 : i32, i32, i32
  }
  func.func @transform_1(%arg0: i32) -> (i32, i32) {
    %c0_i32 = arith.constant 0 : i32
    %c0_i32_0 = arith.constant 0 : i32
    %c0_i32_1 = arith.constant 0 : i32
    return %c0_i32, %c0_i32_0 : i32, i32
  }
  func.func @transform_2(%arg0: i32) -> (i32, i32) {
    %c0_i32 = arith.constant 0 : i32
    %c0_i32_0 = arith.constant 0 : i32
    %c0_i32_1 = arith.constant 0 : i32
    return %c0_i32, %c0_i32_0 : i32, i32
  }
  func.func @transform_3(%arg0: i32) -> (i32, i32, i32) {
    %c0_i32 = arith.constant 0 : i32
    %c0_i32_0 = arith.constant 0 : i32
    %c0_i32_1 = arith.constant 0 : i32
    return %arg0, %c0_i32, %c0_i32_0 : i32, i32, i32
  }
}

</mosaic_0001>

<bundles_post_ra>
// kernel: tpu_custom_call.1
= control target key start
LH: loop header
LB: loop body
LE: loop exit
PB: predicated region body
PF: predicated region fallthrough
CT: control target
= control target key end

     0   :  { %v1490_v0 = vmov 0   ;;  %vm46_vm0 = vcmask 1043456   ;;  %vm363_vm1 = vcmask 1046528   ;;  %vm488_vm2 = vcmask 1045504   ;;  %s2327_s0 = inlined_call_operand.vmem [shape: f32[8,16,1], index: 0, kind: input, shape index: {}]   ;;  %s2328_s1 = inlined_call_operand.vmem [shape: bf16[9,8], index: 1, kind: input, shape index: {}]   ;;  %s2329_s2 = inlined_call_operand.vmem [shape: f32[1,8], index: 2, kind: input, shape index: {}]   ;;  %s2330_s3 = inlined_call_operand.vmem [shape: f32[8,16,8], index: 3, kind: output, shape index: {}]  }
   0x1   :  { %1398 = vset.pattern.permute.xlu1 %v1490_v0  ;;  %1387 = vset.pattern.permute.xlu0 %v1490_v0  ;;  %v18_v1 = vld [vmem:[%s2327_s0 + $0x20] sm:$0xff]  ;;  %v19_v2 = vld [vmem:[%s2327_s0 + $0x28] sm:$0xff]  ;;  %v20_v8 = vld [vmem:[%s2327_s0 + $0x30] sm:$0xff]  ;;  %vm613_vm3 = vcmask 1044480   ;;  %vm862_vm4 = vcmask 1042432   ;;  %vm987_vm5 = vcmask 1041408  }
   0x2   :  { %v14_v3 = vld [vmem:[%s2327_s0] sm:$0xff]  ;;  %v53_v4 = vrot.slane %v18_v1, 4  ;;  %v54_v5 = vrot.slane %v19_v2, 4  ;;  %v15_v6 = vld [vmem:[%s2327_s0 + $0x8] sm:$0xff]  ;;  %v21_v9 = vld [vmem:[%s2327_s0 + $0x38] sm:$0xff]  ;;  %v56_v11 = vrot.slane %v20_v8, 4 }
   0x3   :  { %v47_v7 = vrot.slane %v14_v3, 4  ;;  %v48_v10 = vrot.slane %v15_v6, 4  ;;  %v57_v12 = vrot.slane %v21_v9, 4  ;;  %v16_v16 = vld [vmem:[%s2327_s0 + $0x10] sm:$0xff]  ;;  %v17_v19 = vld [vmem:[%s2327_s0 + $0x18] sm:$0xff]  ;;  %v22_v28 = vld [vmem:[%s2327_s0 + $0x40] sm:$0xff] }
   0x4   :  { %v1530_v13 = vsel %vm46_vm0, %v53_v4, %v54_v5  ;;  %v97_v14 = vsel %vm46_vm0, 0.0, %v53_v4  ;;  %v1538_v17 = vsel %vm46_vm0, %v54_v5, 0.0  ;;  %v24_v20 = vld [vmem:[%s2327_s0 + $0x50] sm:$0xff]  ;;  %v98_v23 = vsel %vm46_vm0, 0.0, %v56_v11  ;;  %v25_v25 = vld [vmem:[%s2327_s0 + $0x58] sm:$0xff]  ;;  %v23_v29 = vld [vmem:[%s2327_s0 + $0x48] sm:$0xff] }
   0x5   :  { %v95_v15 = vsel %vm46_vm0, 0.0, %v47_v7  ;;  %v1541_v18 = vsel %vm46_vm0, %v47_v7, %v48_v10  ;;  %v1550_v21 = vsel %vm46_vm0, %v48_v10, 0.0  ;;  %v1553_v22 = vsel %vm46_vm0, %v56_v11, %v57_v12  ;;  %v28_v32 = vld [vmem:[%s2327_s0 + $0x70] sm:$0xff]  ;;  %v29_v33 = vld [vmem:[%s2327_s0 + $0x78] sm:$0xff]  ;;  %v26_v34 = vld [vmem:[%s2327_s0 + $0x60] sm:$0xff] }
   0x6   :  { %v50_v24 = vrot.slane %v16_v16, 4  ;;  %v51_v26 = vrot.slane %v17_v19, 4  ;;  %v62_v27 = vrot.slane %v24_v20, 4  ;;  %v1399_v30 = vpack.i.bf16 %v1530_v13, %v97_v14  ;;  %v27_v42 = vld [vmem:[%s2327_s0 + $0x68] sm:$0xff]  ;;  %v111_v16 = vld [vmem:[%s2328_s1] sm:$0xf] }
   0x7   :  { %v1388_v35 = vpack.i.bf16 %v1541_v18, %v95_v15  ;;  %v63_v37 = vrot.slane %v25_v25, 4  ;;  %v1404_v39 = vpack.i.bf16 %v1553_v22, %v98_v23  ;;  %v59_v40 = vrot.slane %v22_v28, 4 }
   0x8   :  { %v96_v31 = vsel %vm46_vm0, 0.0, %v50_v24  ;;  %v52_v36 = vsel %vm46_vm0, %v50_v24, %v51_v26  ;;  %v100_v38 = vsel %vm46_vm0, 0.0, %v62_v27  ;;  %1400 = vperm.xlu1 %1398, %v1399_v30   ;;  %v60_v41 = vrot.slane %v23_v29, 4 }
   0x9   :  { %1389 = vperm.xlu0 %1387, %v1388_v35   ;;  %v64_v43 = vsel %vm46_vm0, %v62_v27, %v63_v37  ;;  %v68_v44 = vrot.slane %v28_v32, 4  ;;  %v69_v45 = vrot.slane %v29_v33, 4  ;;  %v65_v46 = vrot.slane %v26_v34, 4 }
   0xa   :  { %v61_v47 = vsel %vm46_vm0, %v59_v40, %v60_v41  ;;  %v99_v48 = vsel %vm46_vm0, 0.0, %v59_v40  ;;  %v66_v51 = vrot.slane %v27_v42, 4  ;;  %v1393_v52 = vpack.i.bf16 %v52_v36, %v96_v31 }
   0xb   :  { %v70_v49 = vsel %vm46_vm0, %v68_v44, %v69_v45  ;;  %v102_v50 = vsel %vm46_vm0, 0.0, %v68_v44  ;;  %v101_v54 = vsel %vm46_vm0, 0.0, %v65_v46  ;;  %v106_v55 = vsel %vm46_vm0, %v57_v12, 0.0 }
   0xc   :  { %1405 = vperm.xlu1 %1398, %v1404_v39   ;;  %v67_v53 = vsel %vm46_vm0, %v65_v46, %v66_v51  ;;  %v1414_v56 = vpack.i.bf16 %v64_v43, %v100_v38  ;;  %v1409_v57 = vpack.i.bf16 %v61_v47, %v99_v48  ;;  %v104_v58 = vsel %vm46_vm0, %v51_v26, 0.0 }
   0xd   :  { %1394 = vperm.xlu0 %1387, %v1393_v52   ;;  %v1424_v59 = vpack.i.bf16 %v70_v49, %v102_v50  ;;  %v1419_v60 = vpack.i.bf16 %v67_v53, %v101_v54  ;;  %v109_v61 = vsel %vm46_vm0, %v66_v51, 0.0  ;;  %v110_v62 = vsel %vm46_vm0, %v69_v45, 0.0 }
   0xe   :  { %v1434_v63 = vpack.i.bf16 %v106_v55, %v1538_v17  ;;  %v107_v0 = vsel %vm46_vm0, %v60_v41, 0.0  ;;  %v108_v1 = vsel %vm46_vm0, %v63_v37, 0.0  ;;  %v1429_v2 = vpack.i.bf16 %v104_v58, %v1550_v21 }
   0xf   :  { %v1444_v3 = vpack.i.bf16 %v110_v62, %v109_v61  ;;  %v1439_v4 = vpack.i.bf16 %v108_v1, %v107_v0  ;;  %v1454_v5 = vpack.i.bf16 %v104_v58, %v52_v36  ;;  %v1449_v6 = vpack.i.bf16 %v1550_v21, %v1541_v18 }
  0x10   :  { %1415 = vperm.xlu1 %1398, %v1414_v56   ;;  %v1464_v7 = vpack.i.bf16 %v106_v55, %v1553_v22  ;;  %v1459_v8 = vpack.i.bf16 %v1538_v17, %v1530_v13  ;;  %v1474_v9 = vpack.i.bf16 %v108_v1, %v64_v43  ;;  %v1469_v10 = vpack.i.bf16 %v107_v0, %v61_v47  ;;  %v112_v13 = vld [vmem:[%s2328_s1 + $0x4] sm:$0x1] }
  0x11   :  { %1410 = vperm.xlu0 %1387, %v1409_v57   ;;  %v1484_v11 = vpack.i.bf16 %v110_v62, %v70_v49  ;;  %v1479_v12 = vpack.i.bf16 %v109_v61, %v67_v53  ;;  %v219_v14 = vlaneseq  ;;  %v113_v18 = vunpack.c.l.bf16 %v111_v16 }
  0x12   :  { %v114_v25 = vunpack.c.l.bf16 %v112_v13  ;;  %vm1112_vm6 = vcmask 1040384   ;;  %vm1364_vm7 = vcmask 64512  }
  0x13   :  { %v220_v15 = vshrl.u32 %v219_v14, 7 }
  0x14   :  { %1425 = vperm.xlu1 %1398, %v1424_v59  }
  0x15   :  { %1420 = vperm.xlu0 %1387, %v1419_v60   ;;  %v221_v19 = vsub.s32 0, %v220_v15  ;;  %v313_v17 = vsub.s32 1, %v220_v15  ;;  %v438_v20 = vsub.s32 2, %v220_v15  ;;  %v563_v21 = vsub.s32 3, %v220_v15 }
  0x16   :  { %v688_v22 = vsub.s32 4, %v220_v15  ;;  %v812_v23 = vsub.s32 5, %v220_v15  ;;  %v937_v24 = vsub.s32 6, %v220_v15  ;;  %v1062_v27 = vsub.s32 7, %v220_v15 }
  0x17   :  { %v1609_v26 = vrot.slane %v113_v18, %v221_v19  ;;  %v1611_v29 = vrot.slane %v113_v18, %v313_v17  ;;  %v1613_v30 = vrot.slane %v113_v18, %v438_v20  ;;  %v1619_v34 = vrot.slane %v113_v18, %v563_v21 }
  0x18   :  { %1435 = vperm.xlu1 %1398, %v1434_v63   ;;  %v1621_v35 = vrot.slane %v113_v18, %v688_v22  ;;  %v1627_v38 = vrot.slane %v113_v18, %v812_v23  ;;  %v1629_v39 = vrot.slane %v113_v18, %v937_v24  ;;  %v1631_v40 = vrot.slane %v113_v18, %v1062_v27 }
  0x19   :  { %1430 = vperm.xlu0 %1387, %v1429_v2   ;;  %v1633_v41 = vrot.slane %v114_v25, %v221_v19 }
  0x1c   :  { %1445 = vperm.xlu1 %1398, %v1444_v3  }
  0x1d   :  { %1440 = vperm.xlu0 %1387, %v1439_v4  }
  0x20   :  { %1455 = vperm.xlu1 %1398, %v1454_v5  }
  0x21   :  { %1450 = vperm.xlu0 %1387, %v1449_v6  }
  0x24   :  { %1465 = vperm.xlu1 %1398, %v1464_v7  }
  0x25   :  { %1460 = vperm.xlu0 %1387, %v1459_v8  }
  0x28   :  { %1475 = vperm.xlu1 %1398, %v1474_v9  }
  0x29   :  { %1470 = vperm.xlu0 %1387, %v1469_v10  }
  0x2c   :  { %1485 = vperm.xlu1 %1398, %v1484_v11  }
  0x2d   :  { %1480 = vperm.xlu0 %1387, %v1479_v12  }
  0x87   :  { %v1401_v28 = vpop.permute.xlu1 %1400 }
  0x88   :  { %v1615_v31 = vunpack.i.h.bf16 %v1401_v28  ;;  %v1617_v32 = vunpack.i.l.bf16 %v1401_v28  ;;  %v1390_v33 = vpop.permute.xlu0 %1389 }
  0x89   :  { %v1623_v36 = vunpack.i.h.bf16 %v1390_v33  ;;  %v1625_v37 = vunpack.i.l.bf16 %v1390_v33 }
  0x8a   :  { %v1637_v42 = vmul.f32 %v1617_v32, %v1609_v26  ;;  %v1641_v43 = vmul.f32 %v1615_v31, %v1609_v26  ;;  %v1651_v47 = vmul.f32 %v1617_v32, %v1611_v29  ;;  %v1655_v48 = vmul.f32 %v1615_v31, %v1611_v29 }
  0x8b   :  { %v1406_v44 = vpop.permute.xlu1 %1405  ;;  %v315_v45 = vmul.f32 %v1625_v37, %v1611_v29  ;;  %v1647_v46 = vmul.f32 %v1623_v36, %v1611_v29  ;;  %v1659_v49 = vmul.f32 %v1625_v37, %v1609_v26  ;;  %v1663_v50 = vmul.f32 %v1623_v36, %v1609_v26 }
  0x8c   :  { %2341 = vst [vmem:[#allocation2_spill] sm:$0xff] %v1641_v43  ;;  %v1667_v51 = vmul.f32 %v1625_v37, %v1613_v30  ;;  %v1671_v52 = vmul.f32 %v1623_v36, %v1613_v30  ;;  %v1395_v53 = vpop.permute.xlu0 %1394  ;;  %v1676_v56 = vmul.f32 %v1625_v37, %v1619_v34  ;;  %v1680_v57 = vmul.f32 %v1623_v36, %v1619_v34 }
  0x8d   :  { %v364_v54 = vrot.slane %v315_v45, 1  ;;  %v2331_v55 = vrot.slane %v1647_v46, 1  ;;  %v1682_v58 = vunpack.i.h.bf16 %v1406_v44  ;;  %v1684_v59 = vunpack.i.l.bf16 %v1406_v44 }
  0x8e   :  { %v1397_v60 = vunpack.i.h.bf16 %v1395_v53  ;;  %v1396_v61 = vunpack.i.l.bf16 %v1395_v53  ;;  %v1701_v6 = vmul.f32 %v1625_v37, %v1621_v35 }
  0x8f   :  { %v1416_v62 = vpop.permute.xlu1 %1415  ;;  %v1689_v63 = vsel %vm363_vm1, %v364_v54, %v2331_v55 }
  0x90   :  { %v1694_v3 = vunpack.i.h.bf16 %v1416_v62  ;;  %v1696_v4 = vunpack.i.l.bf16 %v1416_v62  ;;  %v1411_v7 = vpop.permute.xlu0 %1410  ;;  %v318_v8 = vmul.f32 %v1396_v61, %v1611_v29  ;;  %v1705_v9 = vmul.f32 %v1397_v60, %v1611_v29 }
  0x91   :  { %v443_v10 = vmul.f32 %v1396_v61, %v1613_v30  ;;  %v1709_v11 = vmul.f32 %v1397_v60, %v1613_v30  ;;  %v225_v12 = vmul.f32 %v1396_v61, %v1609_v26  ;;  %v1713_v14 = vmul.f32 %v1397_v60, %v1609_v26 }
  0x92   :  { %2342 = vst [vmem:[#allocation3_spill] sm:$0xff] %v1694_v3  ;;  %2343 = vst [vmem:[#allocation4_spill] sm:$0xff] %v1696_v4  ;;  %v568_v15 = vmul.f32 %v1396_v61, %v1619_v34  ;;  %v1717_v16 = vmul.f32 %v1397_v60, %v1619_v34  ;;  %v369_v19 = vrot.slane %v318_v8, 1  ;;  %v370_v13 = vrot.slane %v1705_v9, 1 }
  0x93   :  { %v1426_v18 = vpop.permute.xlu1 %1425  ;;  %v494_v17 = vrot.slane %v443_v10, 2  ;;  %v495_v20 = vrot.slane %v1709_v11, 2  ;;  %v1721_v21 = vunpack.i.h.bf16 %v1411_v7  ;;  %v1723_v22 = vunpack.i.l.bf16 %v1411_v7 }
  0x94   :  { %v619_v23 = vrot.slane %v568_v15, 3  ;;  %v620_v24 = vrot.slane %v1717_v16, 3  ;;  %v1726_v25 = vunpack.i.h.bf16 %v1426_v18  ;;  %v1728_v27 = vpop.permute.xlu0 %1420  ;;  %v371_v28 = vsel %vm363_vm1, %v369_v19, %v370_v13 }
  0x95   :  { %2344 = vst [vmem:[#allocation5_spill] sm:$0xff] %v1721_v21  ;;  %2345 = vst [vmem:[#allocation6_spill] sm:$0xff] %v1723_v22  ;;  %v693_v33 = vmul.f32 %v1396_v61, %v1621_v35  ;;  %v694_v44 = vmul.f32 %v1397_v60, %v1621_v35  ;;  %v1733_v45 = vunpack.i.l.bf16 %v1426_v18  ;;  %v422_v53 = vadd.f32 %v371_v28, %v225_v12 }
  0x96   :  { %2346 = vst [vmem:[#allocation7_spill] sm:$0xff] %v1726_v25  ;;  %2347 = vst [vmem:[#allocation8_spill] sm:$0xff] %v1728_v27  ;;  %v496_v54 = vsel %vm488_vm2, %v494_v17, %v495_v20  ;;  %v621_v62 = vsel %vm613_vm3, %v619_v23, %v620_v24  ;;  %v817_v10 = vmul.f32 %v1396_v61, %v1627_v38 }
  0x97   :  { %2348 = vst [vmem:[#allocation9_spill] sm:$0xff] %v1733_v45  ;;  %v1436_v7 = vpop.permute.xlu1 %1435  ;;  %v743_v8 = vrot.slane %v693_v33, 4  ;;  %v744_v9 = vrot.slane %v694_v44, 4  ;;  %v818_v11 = vmul.f32 %v1397_v60, %v1627_v38  ;;  %v547_v19 = vadd.f32 %v496_v54, %v422_v53 }
  0x98   :  { %v1739_v15 = vunpack.i.h.bf16 %v1436_v7  ;;  %v1741_v16 = vunpack.i.l.bf16 %v1436_v7  ;;  %v942_v18 = vmul.f32 %v1396_v61, %v1629_v39  ;;  %v1431_v55 = vpop.permute.xlu0 %1430  ;;  %v868_v17 = vrot.slane %v817_v10, 5 }
  0x99   :  { %v745_v12 = vsel %vm46_vm0, %v743_v8, %v744_v9  ;;  %v869_v23 = vrot.slane %v818_v11, 5  ;;  %v943_v28 = vmul.f32 %v1397_v60, %v1629_v39  ;;  %v1433_v33 = vunpack.i.h.bf16 %v1431_v55 }
  0x9a   :  { %v1746_v44 = vunpack.i.l.bf16 %v1431_v55  ;;  %v672_v2 = vadd.f32 %v621_v62, %v547_v19  ;;  %v993_v5 = vrot.slane %v942_v18, 6  ;;  %v1067_v53 = vmul.f32 %v1396_v61, %v1631_v40 }
  0x9b   :  { %v1446_v0 = vpop.permute.xlu1 %1445  ;;  %v870_v7 = vsel %vm862_vm4, %v868_v17, %v869_v23  ;;  %v994_v1 = vrot.slane %v943_v28, 6  ;;  %v1068_v54 = vmul.f32 %v1397_v60, %v1631_v40  ;;  %v320_v10 = vmul.f32 %v1433_v33, %v1611_v29 }
  0x9c   :  { %v1751_v27 = vunpack.i.h.bf16 %v1446_v0  ;;  %v1753_v8 = vunpack.i.l.bf16 %v1446_v0  ;;  %v445_v55 = vmul.f32 %v1433_v33, %v1613_v30  ;;  %v1441_v11 = vpop.permute.xlu0 %1440  ;;  %v570_v62 = vmul.f32 %v1433_v33, %v1619_v34 }
  0x9d   :  { %v695_v19 = vmul.f32 %v1433_v33, %v1621_v35  ;;  %v796_v18 = vadd.f32 %v745_v12, %v672_v2  ;;  %v819_v17 = vmul.f32 %v1433_v33, %v1627_v38  ;;  %v1760_v61 = vunpack.i.h.bf16 %v1441_v11 }
  0x9e   :  { %2349 = vst [vmem:[#allocation10_spill] sm:$0xff] %v1751_v27  ;;  %2350 = vst [vmem:[#allocation11_spill] sm:$0xff] %v1753_v8  ;;  %v1762_v60 = vunpack.i.l.bf16 %v1441_v11  ;;  %v372_v28 = vrot.slane %v320_v10, 1  ;;  %v497_v0 = vrot.slane %v445_v55, 2  ;;  %v622_v27 = vrot.slane %v570_v62, 3 }
  0x9f   :  { %v1456_v8 = vpop.permute.xlu1 %1455  ;;  %v746_v25 = vrot.slane %v695_v19, 4  ;;  %v871_v45 = vrot.slane %v819_v17, 5  ;;  %v921_v21 = vadd.f32 %v870_v7, %v796_v18  ;;  %v944_v7 = vmul.f32 %v1433_v33, %v1629_v39 }
  0xa0   :  { %v1458_v22 = vunpack.i.h.bf16 %v1456_v8  ;;  %v1457_v3 = vunpack.i.l.bf16 %v1456_v8  ;;  %v373_v4 = vsel %vm363_vm1, %v370_v13, %v372_v28  ;;  %v498_v43 = vsel %vm488_vm2, %v495_v20, %v497_v0  ;;  %v1770_v55 = vpop.permute.xlu0 %1450 }
  0xa1   :  { %v423_v2 = vadd.f32 %v373_v4, %v1713_v14  ;;  %v623_v12 = vsel %vm613_vm3, %v620_v24, %v622_v27  ;;  %v747_v11 = vsel %vm46_vm0, %v744_v9, %v746_v25  ;;  %v872_v10 = vsel %vm862_vm4, %v869_v23, %v871_v45 }
  0xa2   :  { %v1296_v62 = vmul.f32 %v1458_v22, %v1633_v41  ;;  %v995_v8 = vsel %vm987_vm5, %v993_v5, %v994_v1  ;;  %v1069_v13 = vmul.f32 %v1433_v33, %v1631_v40  ;;  %v1118_v4 = vrot.slane %v1067_v53, 7 }
  0xa3   :  { %v548_v20 = vadd.f32 %v498_v43, %v423_v2  ;;  %v1046_v19 = vadd.f32 %v995_v8, %v921_v21  ;;  %v1119_v14 = vrot.slane %v1068_v54, 7  ;;  %v996_v24 = vrot.slane %v944_v7, 6 }
  0xa4   :  { %v1121_v27 = vrot.slane %v1069_v13, 7  ;;  %v1295_v25 = vmul.f32 %v1457_v3, %v1633_v41  ;;  %v1453_v45 = vunpack.i.h.bf16 %v1770_v55  ;;  %v1452_v23 = vunpack.i.l.bf16 %v1770_v55  ;;  %v1790_v3 = vld [vmem:[%s2329_s2] ss:$0 sm:$0xff] }
  0xa5   :  { %v673_v9 = vadd.f32 %v623_v12, %v548_v20  ;;  %v1120_v22 = vsel %vm1112_vm6, %v1118_v4, %v1119_v14  ;;  %v317_v5 = vmul.f32 %v1746_v44, %v1611_v29  ;;  %v997_v33 = vsel %vm987_vm5, %v994_v1, %v996_v24 }
  0xa6   :  { %v1122_v43 = vsel %vm1112_vm6, %v1119_v14, %v1121_v27  ;;  %v1171_v21 = vadd.f32 %v1120_v22, %v1046_v19  ;;  %v1785_v53 = vmul.f32 %v1453_v45, %v1633_v41  ;;  %v420_v17 = vadd.f32 %v1689_v63, %v1659_v49 }
  0xa7   :  { %v797_v54 = vadd.f32 %v747_v11, %v673_v9  ;;  %v367_v18 = vrot.slane %v317_v5, 1  ;;  %v442_v28 = vmul.f32 %v1746_v44, %v1613_v30  ;;  %v2351_v0 = vrot.slane %v1671_v52, 2 }
  0xa8   :  { %v1311_v1 = vadd.f32 %v1295_v25, %v1171_v21  ;;  %v2352_v2 = vrot.slane %v1667_v51, 2  ;;  %v567_v7 = vmul.f32 %v1746_v44, %v1619_v34  ;;  %v2353_v8 = vrot.slane %v1680_v57, 3 }
  0xa9   :  { %v2354_v11 = vrot.slane %v1676_v56, 3  ;;  %v922_v49 = vadd.f32 %v872_v10, %v797_v54  ;;  %v2355_v63 = vrot.slane %v1647_v46, 1  ;;  %v492_v19 = vrot.slane %v442_v28, 2 }
  0xaa   :  { %v491_v12 = vsel %vm488_vm2, %v2352_v2, %v2351_v0  ;;  %v1334_v51 = vadd.f32 %v1790_v3, %v1311_v1  ;;  %v617_v24 = vrot.slane %v567_v7, 3  ;;  %v691_v27 = vmul.f32 %v1623_v36, %v1621_v35 }
  0xab   :  { %v616_v13 = vsel %vm613_vm3, %v2354_v11, %v2353_v8  ;;  %v368_v20 = vsel %vm363_vm1, %v2355_v63, %v367_v18  ;;  %v545_v4 = vadd.f32 %v491_v12, %v420_v17  ;;  %v1047_v25 = vadd.f32 %v997_v33, %v922_v49 }
  0xac   :  { %v421_v14 = vadd.f32 %v368_v20, %v1663_v50  ;;  %v2356_v56 = vmov %v2351_v0  ;;  %v692_v46 = vmul.f32 %v1746_v44, %v1621_v35  ;;  %v1350_v9 = vmax.f32 %v1334_v51, 0.0 }
  0xad   :  { %v493_v45 = vsel %vm488_vm2, %v2356_v56, %v492_v19  ;;  %v670_v10 = vadd.f32 %v616_v13, %v545_v4  ;;  %v2357_v5 = vmov %v2353_v8  ;;  %v738_v50 = vrot.slane %v1701_v6, 4 }
  0xae   :  { %v546_v22 = vadd.f32 %v493_v45, %v421_v14  ;;  %v618_v21 = vsel %vm613_vm3, %v2357_v5, %v617_v24  ;;  %v1172_v54 = vadd.f32 %v1122_v43, %v1047_v25  ;;  %v739_v18 = vrot.slane %v691_v27, 4  ;;  %1367 = vst.msk [vmem:[%s2330_s3 + $0x10] sm:$0xff] %vm1364_vm7, %v1350_v9 }
  0xaf   :  { %v741_v17 = vrot.slane %v692_v46, 4  ;;  %v814_v52 = vmul.f32 %v1625_v37, %v1627_v38  ;;  %v815_v28 = vmul.f32 %v1623_v36, %v1627_v38  ;;  %v816_v57 = vmul.f32 %v1746_v44, %v1627_v38 }
  0xb0   :  { %v671_v33 = vadd.f32 %v618_v21, %v546_v22  ;;  %v939_v6 = vmul.f32 %v1625_v37, %v1629_v39  ;;  %v1312_v43 = vadd.f32 %v1296_v62, %v1172_v54  ;;  %v740_v1 = vsel %vm46_vm0, %v738_v50, %v739_v18 }
  0xb1   :  { %v742_v0 = vsel %vm46_vm0, %v739_v18, %v741_v17  ;;  %v863_v2 = vrot.slane %v814_v52, 5  ;;  %v794_v12 = vadd.f32 %v740_v1, %v670_v10  ;;  %v864_v8 = vrot.slane %v815_v28, 5 }
  0xb2   :  { %v795_v7 = vadd.f32 %v742_v0, %v671_v33  ;;  %v866_v11 = vrot.slane %v816_v57, 5  ;;  %v1335_v13 = vadd.f32 %v1790_v3, %v1312_v43  ;;  %v940_v49 = vmul.f32 %v1623_v36, %v1629_v39 }
  0xb3   :  { %v941_v63 = vmul.f32 %v1746_v44, %v1629_v39  ;;  %v988_v20 = vrot.slane %v939_v6, 6  ;;  %v865_v62 = vsel %vm862_vm4, %v863_v2, %v864_v8  ;;  %v1064_v4 = vmul.f32 %v1625_v37, %v1631_v40 }
  0xb4   :  { %v867_v19 = vsel %vm862_vm4, %v864_v8, %v866_v11  ;;  %v1065_v51 = vmul.f32 %v1623_v36, %v1631_v40  ;;  %v1351_v14 = vmax.f32 %v1335_v13, 0.0  ;;  %v919_v24 = vadd.f32 %v865_v62, %v794_v12 }
  0xb5   :  { %v920_v27 = vadd.f32 %v867_v19, %v795_v7  ;;  %v989_v25 = vrot.slane %v940_v49, 6  ;;  %v991_v56 = vrot.slane %v941_v63, 6  ;;  %v1066_v45 = vmul.f32 %v1746_v44, %v1631_v40 }
  0xb6   :  { %v1113_v10 = vrot.slane %v1064_v4, 7  ;;  %v1114_v46 = vrot.slane %v1065_v51, 7  ;;  %1368 = vst.msk [vmem:[%s2330_s3 + $0x18] sm:$0xff] %vm1364_vm7, %v1351_v14  ;;  %v1293_v36 = vmul.f32 %v1452_v23, %v1633_v41  ;;  %v229_v9 = vmul.f32 %v1684_v59, %v1609_v26 }
  0xb7   :  { %v990_v37 = vsel %vm987_vm5, %v988_v20, %v989_v25  ;;  %v230_v22 = vmul.f32 %v1682_v58, %v1609_v26  ;;  %v992_v44 = vsel %vm987_vm5, %v989_v25, %v991_v56  ;;  %v1116_v50 = vrot.slane %v1066_v45, 7 }
  0xb8   :  { %v1044_v5 = vadd.f32 %v990_v37, %v919_v24  ;;  %v1115_v21 = vsel %vm1112_vm6, %v1113_v10, %v1114_v46  ;;  %v1045_v54 = vadd.f32 %v992_v44, %v920_v27  ;;  %v324_v18 = vmul.f32 %v1684_v59, %v1611_v29 }
  0xb9   :  { %v325_v55 = vmul.f32 %v1682_v58, %v1611_v29  ;;  %v326_v23 = vmul.f32 %v1739_v15, %v1611_v29  ;;  %v1117_v17 = vsel %vm1112_vm6, %v1114_v46, %v1116_v50  ;;  %v449_v33 = vmul.f32 %v1684_v59, %v1613_v30 }
  0xba   :  { %v1169_v52 = vadd.f32 %v1115_v21, %v1044_v5  ;;  %v450_v28 = vmul.f32 %v1682_v58, %v1613_v30  ;;  %v1170_v57 = vadd.f32 %v1117_v17, %v1045_v54  ;;  %v379_v6 = vrot.slane %v324_v18, 1 }
  0xbb   :  { %v380_v43 = vrot.slane %v325_v55, 1  ;;  %v382_v1 = vrot.slane %v326_v23, 1  ;;  %v451_v2 = vmul.f32 %v1739_v15, %v1613_v30  ;;  %v504_v12 = vrot.slane %v449_v33, 2 }
  0xbc   :  { %v1309_v0 = vadd.f32 %v1293_v36, %v1169_v52  ;;  %v505_v7 = vrot.slane %v450_v28, 2  ;;  %v1310_v8 = vadd.f32 %v1785_v53, %v1170_v57  ;;  %v574_v49 = vmul.f32 %v1684_v59, %v1619_v34 }
  0xbd   :  { %v381_v11 = vsel %vm363_vm1, %v379_v6, %v380_v43  ;;  %v383_v13 = vsel %vm363_vm1, %v380_v43, %v382_v1  ;;  %v507_v51 = vrot.slane %v451_v2, 2  ;;  %v575_v14 = vmul.f32 %v1682_v58, %v1619_v34 }
  0xbe   :  { %v1332_v63 = vadd.f32 %v1790_v3, %v1309_v0  ;;  %v426_v20 = vadd.f32 %v381_v11, %v229_v9  ;;  %v427_v62 = vadd.f32 %v383_v13, %v230_v22  ;;  %v506_v19 = vsel %vm488_vm2, %v504_v12, %v505_v7 }
  0xbf   :  { %v1333_v4 = vadd.f32 %v1790_v3, %v1310_v8  ;;  %v576_v53 = vmul.f32 %v1739_v15, %v1619_v34  ;;  %v629_v25 = vrot.slane %v574_v49, 3  ;;  %v699_v56 = vmul.f32 %v1684_v59, %v1621_v35 }
  0xc0   :  { %v1348_v24 = vmax.f32 %v1332_v63, 0.0  ;;  %v551_v27 = vadd.f32 %v506_v19, %v426_v20  ;;  %v508_v10 = vsel %vm488_vm2, %v505_v7, %v507_v51  ;;  %v630_v46 = vrot.slane %v575_v14, 3  ;;  %v1466_v20 = vpop.permute.xlu1 %1465 }
  0xc1   :  { %v1349_v45 = vmax.f32 %v1333_v4, 0.0  ;;  %v632_v37 = vrot.slane %v576_v53, 3  ;;  %v552_v36 = vadd.f32 %v508_v10, %v427_v62  ;;  %v700_v9 = vmul.f32 %v1682_v58, %v1621_v35 }
  0xc2   :  { %1365 = vst.msk [vmem:[%s2330_s3] sm:$0xff] %vm1364_vm7, %v1348_v24  ;;  %v701_v22 = vmul.f32 %v1739_v15, %v1621_v35  ;;  %v753_v44 = vrot.slane %v699_v56, 4  ;;  %v631_v5 = vsel %vm613_vm3, %v629_v25, %v630_v46  ;;  %v823_v50 = vmul.f32 %v1684_v59, %v1627_v38 }
  0xc3   :  { %1366 = vst.msk [vmem:[%s2330_s3 + $0x8] sm:$0xff] %vm1364_vm7, %v1349_v45  ;;  %v633_v21 = vsel %vm613_vm3, %v630_v46, %v632_v37  ;;  %v824_v54 = vmul.f32 %v1682_v58, %v1627_v38  ;;  %v676_v18 = vadd.f32 %v631_v5, %v551_v27  ;;  %v754_v23 = vrot.slane %v700_v9, 4 }
  0xc4   :  { %v677_v55 = vadd.f32 %v633_v21, %v552_v36  ;;  %v756_v17 = vrot.slane %v701_v22, 4  ;;  %v825_v52 = vmul.f32 %v1739_v15, %v1627_v38  ;;  %v878_v33 = vrot.slane %v823_v50, 5 }
  0xc5   :  { %v879_v28 = vrot.slane %v824_v54, 5  ;;  %v948_v57 = vmul.f32 %v1684_v59, %v1629_v39  ;;  %v755_v6 = vsel %vm46_vm0, %v753_v44, %v754_v23  ;;  %v949_v1 = vmul.f32 %v1682_v58, %v1629_v39 }
  0xc6   :  { %v757_v43 = vsel %vm46_vm0, %v754_v23, %v756_v17  ;;  %v950_v0 = vmul.f32 %v1739_v15, %v1629_v39  ;;  %v800_v2 = vadd.f32 %v755_v6, %v676_v18  ;;  %v881_v8 = vrot.slane %v825_v52, 5 }
  0xc7   :  { %v801_v12 = vadd.f32 %v757_v43, %v677_v55  ;;  %v880_v7 = vsel %vm862_vm4, %v878_v33, %v879_v28  ;;  %v1003_v11 = vrot.slane %v948_v57, 6  ;;  %v1004_v13 = vrot.slane %v949_v1, 6  ;;  %v2358_v33 = vld [vmem:[#allocation2_spill] sm:$0xff] }
  0xc8   :  { %v1006_v49 = vrot.slane %v950_v0, 6  ;;  %v1073_v63 = vmul.f32 %v1684_v59, %v1631_v40  ;;  %v882_v62 = vsel %vm862_vm4, %v879_v28, %v881_v8  ;;  %v925_v19 = vadd.f32 %v880_v7, %v800_v2 }
  0xc9   :  { %v1074_v4 = vmul.f32 %v1682_v58, %v1631_v40  ;;  %v1075_v51 = vmul.f32 %v1739_v15, %v1631_v40  ;;  %v926_v14 = vadd.f32 %v882_v62, %v801_v12  ;;  %v1005_v53 = vsel %vm987_vm5, %v1003_v11, %v1004_v13 }
  0xca   :  { %v1007_v24 = vsel %vm987_vm5, %v1004_v13, %v1006_v49  ;;  %v1128_v27 = vrot.slane %v1073_v63, 7  ;;  %v1050_v25 = vadd.f32 %v1005_v53, %v925_v19  ;;  %v1468_v59 = vunpack.i.h.bf16 %v1466_v20 }
  0xcb   :  { %v1129_v56 = vrot.slane %v1074_v4, 7  ;;  %v1131_v45 = vrot.slane %v1075_v51, 7  ;;  %v1051_v10 = vadd.f32 %v1007_v24, %v926_v14  ;;  %v1467_v46 = vunpack.i.l.bf16 %v1466_v20 }
  0xcc   :  { %v323_v37 = vmul.f32 %v1741_v16, %v1611_v29  ;;  %v374_v58 = vrot.slane %v1651_v47, 1  ;;  %v1300_v9 = vmul.f32 %v1468_v59, %v1633_v41  ;;  %v375_v22 = vrot.slane %v1655_v48, 1 }
  0xcd   :  { %v1130_v36 = vsel %vm1112_vm6, %v1128_v27, %v1129_v56  ;;  %v1132_v15 = vsel %vm1112_vm6, %v1129_v56, %v1131_v45  ;;  %v1299_v21 = vmul.f32 %v1467_v46, %v1633_v41  ;;  %v446_v18 = vmul.f32 %v1617_v32, %v1613_v30 }
  0xce   :  { %v1175_v44 = vadd.f32 %v1130_v36, %v1050_v25  ;;  %v1176_v5 = vadd.f32 %v1132_v15, %v1051_v10  ;;  %v377_v50 = vrot.slane %v323_v37, 1  ;;  %v376_v54 = vsel %vm363_vm1, %v374_v58, %v375_v22 }
  0xcf   :  { %v447_v47 = vmul.f32 %v1615_v31, %v1613_v30  ;;  %v448_v55 = vmul.f32 %v1741_v16, %v1613_v30  ;;  %v424_v52 = vadd.f32 %v376_v54, %v1637_v42  ;;  %v499_v57 = vrot.slane %v446_v18, 2  ;;  %v1461_v54 = vpop.permute.xlu0 %1460 }
  0xd0   :  { %v1316_v23 = vadd.f32 %v1300_v9, %v1176_v5  ;;  %v1315_v17 = vadd.f32 %v1299_v21, %v1175_v44  ;;  %v378_v48 = vsel %vm363_vm1, %v375_v22, %v377_v50  ;;  %v571_v2 = vmul.f32 %v1617_v32, %v1619_v34 }
  0xd1   :  { %v425_v28 = vadd.f32 %v378_v48, %v2358_v33  ;;  %v500_v6 = vrot.slane %v447_v47, 2  ;;  %v502_v43 = vrot.slane %v448_v55, 2  ;;  %v572_v12 = vmul.f32 %v1615_v31, %v1619_v34 }
  0xd2   :  { %v1339_v1 = vadd.f32 %v1790_v3, %v1316_v23  ;;  %v1338_v0 = vadd.f32 %v1790_v3, %v1315_v17  ;;  %v573_v42 = vmul.f32 %v1741_v16, %v1619_v34  ;;  %v696_v11 = vmul.f32 %v1617_v32, %v1621_v35 }
  0xd3   :  { %v501_v7 = vsel %vm488_vm2, %v499_v57, %v500_v6  ;;  %v503_v8 = vsel %vm488_vm2, %v500_v6, %v502_v43  ;;  %v624_v62 = vrot.slane %v571_v2, 3  ;;  %v625_v19 = vrot.slane %v572_v12, 3 }
  0xd4   :  { %v1355_v13 = vmax.f32 %v1339_v1, 0.0  ;;  %v1354_v49 = vmax.f32 %v1338_v0, 0.0  ;;  %v549_v63 = vadd.f32 %v501_v7, %v424_v52  ;;  %v550_v20 = vadd.f32 %v503_v8, %v425_v28 }
  0xd5   :  { %v627_v4 = vrot.slane %v573_v42, 3  ;;  %v697_v51 = vmul.f32 %v1615_v31, %v1621_v35  ;;  %v698_v14 = vmul.f32 %v1741_v16, %v1621_v35  ;;  %v748_v53 = vrot.slane %v696_v11, 4 }
  0xd6   :  { %1372 = vst.msk [vmem:[%s2330_s3 + $0x38] sm:$0xff] %vm1364_vm7, %v1355_v13  ;;  %1371 = vst.msk [vmem:[%s2330_s3 + $0x30] sm:$0xff] %vm1364_vm7, %v1354_v49  ;;  %v820_v24 = vmul.f32 %v1617_v32, %v1627_v38  ;;  %v821_v27 = vmul.f32 %v1615_v31, %v1627_v38  ;;  %v626_v25 = vsel %vm613_vm3, %v624_v62, %v625_v19  ;;  %v1463_v43 = vunpack.i.h.bf16 %v1461_v54 }
  0xd7   :  { %v628_v56 = vsel %vm613_vm3, %v625_v19, %v627_v4  ;;  %v749_v45 = vrot.slane %v697_v51, 4  ;;  %v822_v59 = vmul.f32 %v1741_v16, %v1627_v38  ;;  %v674_v10 = vadd.f32 %v626_v25, %v549_v63 }
  0xd8   :  { %v675_v46 = vadd.f32 %v628_v56, %v550_v20  ;;  %v751_v37 = vrot.slane %v698_v14, 4  ;;  %v873_v58 = vrot.slane %v820_v24, 5  ;;  %v874_v15 = vrot.slane %v821_v27, 5 }
  0xd9   :  { %v750_v36 = vsel %vm46_vm0, %v748_v53, %v749_v45  ;;  %v876_v9 = vrot.slane %v822_v59, 5  ;;  %v945_v22 = vmul.f32 %v1617_v32, %v1629_v39  ;;  %v946_v21 = vmul.f32 %v1615_v31, %v1629_v39 }
  0xda   :  { %v752_v44 = vsel %vm46_vm0, %v749_v45, %v751_v37  ;;  %v798_v5 = vadd.f32 %v750_v36, %v674_v10  ;;  %v947_v50 = vmul.f32 %v1741_v16, %v1629_v39  ;;  %v875_v47 = vsel %vm862_vm4, %v873_v58, %v874_v15 }
  0xdb   :  { %v799_v18 = vadd.f32 %v752_v44, %v675_v46  ;;  %v877_v55 = vsel %vm862_vm4, %v874_v15, %v876_v9  ;;  %v998_v23 = vrot.slane %v945_v22, 6  ;;  %v999_v48 = vrot.slane %v946_v21, 6 }
  0xdc   :  { %v923_v17 = vadd.f32 %v875_v47, %v798_v5  ;;  %v1001_v52 = vrot.slane %v947_v50, 6  ;;  %v1070_v33 = vmul.f32 %v1617_v32, %v1631_v40  ;;  %v1071_v57 = vmul.f32 %v1615_v31, %v1631_v40  ;;  %v2359_v31 = vld [vmem:[#allocation4_spill] sm:$0xff] }
  0xdd   :  { %v924_v28 = vadd.f32 %v877_v55, %v799_v18  ;;  %v1072_v6 = vmul.f32 %v1741_v16, %v1631_v40  ;;  %v1000_v1 = vsel %vm987_vm5, %v998_v23, %v999_v48  ;;  %v1462_v12 = vunpack.i.l.bf16 %v1461_v54  ;;  %v2360_v16 = vld [vmem:[#allocation3_spill] sm:$0xff] }
  0xde   :  { %v1002_v0 = vsel %vm987_vm5, %v999_v48, %v1001_v52  ;;  %v1123_v2 = vrot.slane %v1070_v33, 7  ;;  %v1048_v7 = vadd.f32 %v1000_v1, %v923_v17  ;;  %v1124_v42 = vrot.slane %v1071_v57, 7  ;;  %v1476_v52 = vpop.permute.xlu1 %1475 }
  0xdf   :  { %v1049_v8 = vadd.f32 %v1002_v0, %v924_v28  ;;  %v1126_v11 = vrot.slane %v1072_v6, 7  ;;  %v1298_v32 = vmul.f32 %v1463_v43, %v1633_v41  ;;  %v1297_v13 = vmul.f32 %v1462_v12, %v1633_v41 }
  0xe0   :  { %v233_v49 = vmul.f32 %v2359_v31, %v1609_v26  ;;  %v2005_v63 = vmul.f32 %v2360_v16, %v1609_v26  ;;  %v1125_v20 = vsel %vm1112_vm6, %v1123_v2, %v1124_v42  ;;  %v330_v19 = vmul.f32 %v2359_v31, %v1611_v29 }
  0xe1   :  { %v1127_v62 = vsel %vm1112_vm6, %v1124_v42, %v1126_v11  ;;  %v2013_v4 = vmul.f32 %v2360_v16, %v1611_v29  ;;  %v1173_v51 = vadd.f32 %v1125_v20, %v1048_v7  ;;  %v455_v53 = vmul.f32 %v2359_v31, %v1613_v30 }
  0xe2   :  { %v1174_v14 = vadd.f32 %v1127_v62, %v1049_v8  ;;  %v2019_v24 = vmul.f32 %v2360_v16, %v1613_v30  ;;  %v389_v27 = vrot.slane %v330_v19, 1  ;;  %v580_v56 = vmul.f32 %v2359_v31, %v1619_v34 }
  0xe3   :  { %v390_v25 = vrot.slane %v2013_v4, 1  ;;  %v2026_v45 = vmul.f32 %v2360_v16, %v1619_v34  ;;  %v1313_v10 = vadd.f32 %v1297_v13, %v1173_v51  ;;  %v514_v46 = vrot.slane %v455_v53, 2 }
  0xe4   :  { %v1314_v59 = vadd.f32 %v1298_v32, %v1174_v14  ;;  %v515_v37 = vrot.slane %v2019_v24, 2  ;;  %v639_v36 = vrot.slane %v580_v56, 3  ;;  %v705_v9 = vmul.f32 %v2359_v31, %v1621_v35 }
  0xe5   :  { %v391_v58 = vsel %vm363_vm1, %v389_v27, %v390_v25  ;;  %v640_v15 = vrot.slane %v2026_v45, 3  ;;  %v1336_v44 = vadd.f32 %v1790_v3, %v1313_v10  ;;  %v706_v54 = vmul.f32 %v2360_v16, %v1621_v35 }
  0xe6   :  { %v1337_v22 = vadd.f32 %v1790_v3, %v1314_v59  ;;  %v430_v5 = vadd.f32 %v391_v58, %v233_v49  ;;  %v516_v21 = vsel %vm488_vm2, %v514_v46, %v515_v37  ;;  %v763_v18 = vrot.slane %v705_v9, 4 }
  0xe7   :  { %v641_v50 = vsel %vm613_vm3, %v639_v36, %v640_v15  ;;  %v829_v47 = vmul.f32 %v2359_v31, %v1627_v38  ;;  %v1352_v23 = vmax.f32 %v1336_v44, 0.0  ;;  %v830_v48 = vmul.f32 %v2360_v16, %v1627_v38  ;;  %v2081_v44 = vpop.permute.xlu0 %1470 }
  0xe8   :  { %v1353_v55 = vmax.f32 %v1337_v22, 0.0  ;;  %v555_v17 = vadd.f32 %v516_v21, %v430_v5  ;;  %v764_v33 = vrot.slane %v706_v54, 4  ;;  %v954_v57 = vmul.f32 %v2359_v31, %v1629_v39 }
  0xe9   :  { %v888_v28 = vrot.slane %v829_v47, 5  ;;  %v955_v6 = vmul.f32 %v2360_v16, %v1629_v39  ;;  %1369 = vst.msk [vmem:[%s2330_s3 + $0x20] sm:$0xff] %vm1364_vm7, %v1352_v23  ;;  %v889_v1 = vrot.slane %v830_v48, 5  ;;  %v1079_v0 = vmul.f32 %v2359_v31, %v1631_v40 }
  0xea   :  { %1370 = vst.msk [vmem:[%s2330_s3 + $0x28] sm:$0xff] %vm1364_vm7, %v1353_v55  ;;  %v680_v43 = vadd.f32 %v641_v50, %v555_v17  ;;  %v1080_v2 = vmul.f32 %v2360_v16, %v1631_v40  ;;  %v765_v12 = vsel %vm46_vm0, %v763_v18, %v764_v33  ;;  %v1013_v7 = vrot.slane %v954_v57, 6 }
  0xeb   :  { %v1014_v8 = vrot.slane %v955_v6, 6  ;;  %v1478_v42 = vunpack.i.h.bf16 %v1476_v52  ;;  %v890_v32 = vsel %vm862_vm4, %v888_v28, %v889_v1  ;;  %v1138_v13 = vrot.slane %v1079_v0, 7 }
  0xec   :  { %v804_v11 = vadd.f32 %v765_v12, %v680_v43  ;;  %v1139_v49 = vrot.slane %v1080_v2, 7  ;;  %v1477_v19 = vunpack.i.l.bf16 %v1476_v52  ;;  %v332_v31 = vmul.f32 %v1760_v61, %v1611_v29 }
  0xed   :  { %v1015_v20 = vsel %vm987_vm5, %v1013_v7, %v1014_v8  ;;  %v2063_v62 = vmul.f32 %v1478_v42, %v1633_v41  ;;  %v457_v51 = vmul.f32 %v1760_v61, %v1613_v30  ;;  %v582_v14 = vmul.f32 %v1760_v61, %v1619_v34 }
  0xee   :  { %v929_v16 = vadd.f32 %v890_v32, %v804_v11  ;;  %v1140_v4 = vsel %vm1112_vm6, %v1138_v13, %v1139_v49  ;;  %v392_v53 = vrot.slane %v332_v31, 1  ;;  %v707_v24 = vmul.f32 %v1760_v61, %v1621_v35 }
  0xef   :  { %v831_v27 = vmul.f32 %v1760_v61, %v1627_v38  ;;  %v956_v56 = vmul.f32 %v1760_v61, %v1629_v39  ;;  %v517_v59 = vrot.slane %v457_v51, 2  ;;  %v642_v10 = vrot.slane %v582_v14, 3 }
  0xf0   :  { %v1054_v45 = vadd.f32 %v1015_v20, %v929_v16  ;;  %v1081_v46 = vmul.f32 %v1760_v61, %v1631_v40  ;;  %v393_v58 = vsel %vm363_vm1, %v390_v25, %v392_v53  ;;  %v766_v36 = vrot.slane %v707_v24, 4 }
  0xf1   :  { %v891_v9 = vrot.slane %v831_v27, 5  ;;  %v1016_v22 = vrot.slane %v956_v56, 6  ;;  %v431_v21 = vadd.f32 %v393_v58, %v2005_v63  ;;  %v518_v50 = vsel %vm488_vm2, %v515_v37, %v517_v59  ;;  %v2361_v37 = vld [vmem:[#allocation6_spill] sm:$0xff] }
  0xf2   :  { %v1179_v5 = vadd.f32 %v1140_v4, %v1054_v45  ;;  %v643_v54 = vsel %vm613_vm3, %v640_v15, %v642_v10  ;;  %v767_v18 = vsel %vm46_vm0, %v764_v33, %v766_v36  ;;  %v1141_v55 = vrot.slane %v1081_v46, 7  ;;  %v2362_v15 = vld [vmem:[#allocation5_spill] sm:$0xff] }
  0xf3   :  { %v892_v47 = vsel %vm862_vm4, %v889_v1, %v891_v9  ;;  %v1017_v61 = vsel %vm987_vm5, %v1014_v8, %v1016_v22  ;;  %v556_v25 = vadd.f32 %v518_v50, %v431_v21  ;;  %v1303_v23 = vmul.f32 %v1477_v19, %v1633_v41 }
  0xf4   :  { %v1473_v17 = vunpack.i.h.bf16 %v2081_v44  ;;  %v1472_v48 = vunpack.i.l.bf16 %v2081_v44  ;;  %v1142_v63 = vsel %vm1112_vm6, %v1139_v49, %v1141_v55  ;;  %v231_v52 = vmul.f32 %v2361_v37, %v1609_v26 }
  0xf5   :  { %v232_v33 = vmul.f32 %v2362_v15, %v1609_v26  ;;  %v327_v28 = vmul.f32 %v2361_v37, %v1611_v29  ;;  %v681_v57 = vadd.f32 %v643_v54, %v556_v25  ;;  %v1319_v6 = vadd.f32 %v1303_v23, %v1179_v5 }
  0xf6   :  { %v2100_v43 = vmul.f32 %v1473_v17, %v1633_v41  ;;  %v328_v1 = vmul.f32 %v2362_v15, %v1611_v29  ;;  %v329_v0 = vmul.f32 %v1762_v60, %v1611_v29  ;;  %v452_v12 = vmul.f32 %v2361_v37, %v1613_v30 }
  0xf7   :  { %v384_v2 = vrot.slane %v327_v28, 1  ;;  %v453_v7 = vmul.f32 %v2362_v15, %v1613_v30  ;;  %v805_v8 = vadd.f32 %v767_v18, %v681_v57  ;;  %v1342_v42 = vadd.f32 %v1790_v3, %v1319_v6 }
  0xf8   :  { %v385_v11 = vrot.slane %v328_v1, 1  ;;  %v454_v32 = vmul.f32 %v1762_v60, %v1613_v30  ;;  %v387_v13 = vrot.slane %v329_v0, 1  ;;  %v509_v49 = vrot.slane %v452_v12, 2 }
  0xf9   :  { %v510_v20 = vrot.slane %v453_v7, 2  ;;  %v577_v19 = vmul.f32 %v2361_v37, %v1619_v34  ;;  %v930_v31 = vadd.f32 %v892_v47, %v805_v8  ;;  %v1358_v16 = vmax.f32 %v1342_v42, 0.0 }
  0xfa   :  { %v386_v4 = vsel %vm363_vm1, %v384_v2, %v385_v11  ;;  %v512_v51 = vrot.slane %v454_v32, 2  ;;  %v388_v14 = vsel %vm363_vm1, %v385_v11, %v387_v13  ;;  %v578_v27 = vmul.f32 %v2362_v15, %v1619_v34 }
  0xfb   :  { %v428_v53 = vadd.f32 %v386_v4, %v231_v52  ;;  %v511_v24 = vsel %vm488_vm2, %v509_v49, %v510_v20  ;;  %v1055_v56 = vadd.f32 %v1017_v61, %v930_v31  ;;  %1375 = vst.msk [vmem:[%s2330_s3 + $0x50] sm:$0xff] %vm1364_vm7, %v1358_v16  ;;  %v429_v45 = vadd.f32 %v388_v14, %v232_v33 }
  0xfc   :  { %v513_v59 = vsel %vm488_vm2, %v510_v20, %v512_v51  ;;  %v579_v10 = vmul.f32 %v1762_v60, %v1619_v34  ;;  %v634_v58 = vrot.slane %v577_v19, 3  ;;  %v635_v36 = vrot.slane %v578_v27, 3 }
  0xfd   :  { %v553_v46 = vadd.f32 %v511_v24, %v428_v53  ;;  %v702_v9 = vmul.f32 %v2361_v37, %v1621_v35  ;;  %v1180_v22 = vadd.f32 %v1142_v63, %v1055_v56  ;;  %v554_v5 = vadd.f32 %v513_v59, %v429_v45  ;;  %v2363_v45 = vld [vmem:[#allocation9_spill] sm:$0xff] }
  0xfe   :  { %v637_v21 = vrot.slane %v579_v10, 3  ;;  %v703_v50 = vmul.f32 %v2362_v15, %v1621_v35  ;;  %v636_v54 = vsel %vm613_vm3, %v634_v58, %v635_v36  ;;  %v704_v18 = vmul.f32 %v1762_v60, %v1621_v35  ;;  %v2364_v10 = vld [vmem:[#allocation7_spill] sm:$0xff] }
  0xff   :  { %v758_v47 = vrot.slane %v702_v9, 4  ;;  %v826_v61 = vmul.f32 %v2361_v37, %v1627_v38  ;;  %v1320_v55 = vadd.f32 %v2063_v62, %v1180_v22  ;;  %v678_v23 = vadd.f32 %v636_v54, %v553_v46 }
 0x100   :  { %v638_v25 = vsel %vm613_vm3, %v635_v36, %v637_v21  ;;  %v759_v17 = vrot.slane %v703_v50, 4  ;;  %v761_v52 = vrot.slane %v704_v18, 4  ;;  %v827_v33 = vmul.f32 %v2362_v15, %v1627_v38 }
 0x101   :  { %v679_v63 = vadd.f32 %v638_v25, %v554_v5  ;;  %v828_v28 = vmul.f32 %v1762_v60, %v1627_v38  ;;  %v1343_v57 = vadd.f32 %v1790_v3, %v1320_v55  ;;  %v883_v1 = vrot.slane %v826_v61, 5 }
 0x102   :  { %v760_v6 = vsel %vm46_vm0, %v758_v47, %v759_v17  ;;  %v951_v62 = vmul.f32 %v2361_v37, %v1629_v39  ;;  %v762_v0 = vsel %vm46_vm0, %v759_v17, %v761_v52  ;;  %v884_v12 = vrot.slane %v827_v33, 5 }
 0x103   :  { %v802_v2 = vadd.f32 %v760_v6, %v678_v23  ;;  %v886_v7 = vrot.slane %v828_v28, 5  ;;  %v1359_v8 = vmax.f32 %v1343_v57, 0.0  ;;  %v803_v42 = vadd.f32 %v762_v0, %v679_v63 }
 0x104   :  { %v952_v11 = vmul.f32 %v2362_v15, %v1629_v39  ;;  %v953_v32 = vmul.f32 %v1762_v60, %v1629_v39  ;;  %v885_v13 = vsel %vm862_vm4, %v883_v1, %v884_v12  ;;  %v1008_v20 = vrot.slane %v951_v62, 6 }
 0x105   :  { %v887_v49 = vsel %vm862_vm4, %v884_v12, %v886_v7  ;;  %v1076_v19 = vmul.f32 %v2361_v37, %v1631_v40  ;;  %1376 = vst.msk [vmem:[%s2330_s3 + $0x58] sm:$0xff] %vm1364_vm7, %v1359_v8  ;;  %v927_v31 = vadd.f32 %v885_v13, %v802_v2  ;;  %v1077_v14 = vmul.f32 %v2362_v15, %v1631_v40 }
 0x106   :  { %v928_v16 = vadd.f32 %v887_v49, %v803_v42  ;;  %v1009_v4 = vrot.slane %v952_v11, 6  ;;  %v1011_v51 = vrot.slane %v953_v32, 6  ;;  %v1078_v53 = vmul.f32 %v1762_v60, %v1631_v40 }
 0x107   :  { %v1133_v24 = vrot.slane %v1076_v19, 7  ;;  %v1301_v37 = vmul.f32 %v1472_v48, %v1633_v41  ;;  %v237_v59 = vmul.f32 %v2363_v45, %v1609_v26  ;;  %v238_v46 = vmul.f32 %v2364_v10, %v1609_v26  ;;  %v2365_v48 = vld [vmem:[#allocation10_spill] sm:$0xff] }
 0x108   :  { %v1010_v27 = vsel %vm987_vm5, %v1008_v20, %v1009_v4  ;;  %v1012_v56 = vsel %vm987_vm5, %v1009_v4, %v1011_v51  ;;  %v1134_v36 = vrot.slane %v1077_v14, 7  ;;  %v1136_v9 = vrot.slane %v1078_v53, 7 }
 0x109   :  { %v1052_v58 = vadd.f32 %v1010_v27, %v927_v31  ;;  %v1053_v15 = vadd.f32 %v1012_v56, %v928_v16  ;;  %v336_v60 = vmul.f32 %v2363_v45, %v1611_v29  ;;  %v337_v44 = vmul.f32 %v2364_v10, %v1611_v29 }
 0x10a   :  { %v338_v22 = vmul.f32 %v2365_v48, %v1611_v29  ;;  %v461_v5 = vmul.f32 %v2363_v45, %v1613_v30  ;;  %v1135_v21 = vsel %vm1112_vm6, %v1133_v24, %v1134_v36  ;;  %v1137_v50 = vsel %vm1112_vm6, %v1134_v36, %v1136_v9 }
 0x10b   :  { %v462_v54 = vmul.f32 %v2364_v10, %v1613_v30  ;;  %v463_v18 = vmul.f32 %v2365_v48, %v1613_v30  ;;  %v1177_v47 = vadd.f32 %v1135_v21, %v1052_v58  ;;  %v1178_v61 = vadd.f32 %v1137_v50, %v1053_v15 }
 0x10c   :  { %v399_v55 = vrot.slane %v336_v60, 1  ;;  %v400_v25 = vrot.slane %v337_v44, 1  ;;  %v402_v23 = vrot.slane %v338_v22, 1  ;;  %v524_v17 = vrot.slane %v461_v5, 2 }
 0x10d   :  { %v525_v63 = vrot.slane %v462_v54, 2  ;;  %v527_v52 = vrot.slane %v463_v18, 2  ;;  %v1317_v33 = vadd.f32 %v1301_v37, %v1177_v47  ;;  %v1318_v28 = vadd.f32 %v2100_v43, %v1178_v61  ;;  %v1486_v61 = vpop.permute.xlu1 %1485 }
 0x10e   :  { %v401_v57 = vsel %vm363_vm1, %v399_v55, %v400_v25  ;;  %v586_v6 = vmul.f32 %v2363_v45, %v1619_v34  ;;  %v403_v1 = vsel %vm363_vm1, %v400_v25, %v402_v23  ;;  %v587_v43 = vmul.f32 %v2364_v10, %v1619_v34 }
 0x10f   :  { %v434_v62 = vadd.f32 %v401_v57, %v237_v59  ;;  %v526_v0 = vsel %vm488_vm2, %v524_v17, %v525_v63  ;;  %v528_v2 = vsel %vm488_vm2, %v525_v63, %v527_v52  ;;  %v1340_v12 = vadd.f32 %v1790_v3, %v1317_v33 }
 0x110   :  { %v1341_v7 = vadd.f32 %v1790_v3, %v1318_v28  ;;  %v435_v8 = vadd.f32 %v403_v1, %v238_v46  ;;  %v588_v11 = vmul.f32 %v2365_v48, %v1619_v34  ;;  %v649_v32 = vrot.slane %v586_v6, 3 }
 0x111   :  { %v559_v42 = vadd.f32 %v526_v0, %v434_v62  ;;  %v711_v13 = vmul.f32 %v2363_v45, %v1621_v35  ;;  %v1356_v49 = vmax.f32 %v1340_v12, 0.0  ;;  %v650_v31 = vrot.slane %v587_v43, 3  ;;  %v2366_v43 = vld [vmem:[#allocation11_spill] sm:$0xff] }
 0x112   :  { %v1357_v20 = vmax.f32 %v1341_v7, 0.0  ;;  %v560_v19 = vadd.f32 %v528_v2, %v435_v8  ;;  %v652_v16 = vrot.slane %v588_v11, 3  ;;  %v712_v4 = vmul.f32 %v2364_v10, %v1621_v35 }
 0x113   :  { %v713_v51 = vmul.f32 %v2365_v48, %v1621_v35  ;;  %v773_v14 = vrot.slane %v711_v13, 4  ;;  %1373 = vst.msk [vmem:[%s2330_s3 + $0x40] sm:$0xff] %vm1364_vm7, %v1356_v49  ;;  %v651_v53 = vsel %vm613_vm3, %v649_v32, %v650_v31  ;;  %v835_v24 = vmul.f32 %v2363_v45, %v1627_v38  ;;  %v2367_v49 = vld [vmem:[#allocation8_spill] sm:$0xff] }
 0x114   :  { %1374 = vst.msk [vmem:[%s2330_s3 + $0x48] sm:$0xff] %vm1364_vm7, %v1357_v20  ;;  %v836_v37 = vmul.f32 %v2364_v10, %v1627_v38  ;;  %v837_v27 = vmul.f32 %v2365_v48, %v1627_v38  ;;  %v653_v56 = vsel %vm613_vm3, %v650_v31, %v652_v16  ;;  %v684_v59 = vadd.f32 %v651_v53, %v559_v42  ;;  %v2260_v53 = vpop.permute.xlu0 %1480 }
 0x115   :  { %v774_v46 = vrot.slane %v712_v4, 4  ;;  %v776_v58 = vrot.slane %v713_v51, 4  ;;  %v685_v15 = vadd.f32 %v653_v56, %v560_v19  ;;  %v898_v36 = vrot.slane %v835_v24, 5 }
 0x116   :  { %v899_v9 = vrot.slane %v836_v37, 5  ;;  %v901_v60 = vrot.slane %v837_v27, 5  ;;  %v960_v5 = vmul.f32 %v2363_v45, %v1629_v39  ;;  %v961_v21 = vmul.f32 %v2364_v10, %v1629_v39 }
 0x117   :  { %v775_v44 = vsel %vm46_vm0, %v773_v14, %v774_v46  ;;  %v777_v22 = vsel %vm46_vm0, %v774_v46, %v776_v58  ;;  %v962_v55 = vmul.f32 %v2365_v48, %v1629_v39  ;;  %v1085_v17 = vmul.f32 %v2363_v45, %v1631_v40 }
 0x118   :  { %v808_v50 = vadd.f32 %v775_v44, %v684_v59  ;;  %v809_v54 = vadd.f32 %v777_v22, %v685_v15  ;;  %v900_v18 = vsel %vm862_vm4, %v898_v36, %v899_v9  ;;  %v902_v47 = vsel %vm862_vm4, %v899_v9, %v901_v60 }
 0x119   :  { %v1023_v25 = vrot.slane %v960_v5, 6  ;;  %v1024_v23 = vrot.slane %v961_v21, 6  ;;  %v1086_v33 = vmul.f32 %v2364_v10, %v1631_v40  ;;  %v1087_v28 = vmul.f32 %v2365_v48, %v1631_v40 }
 0x11a   :  { %v933_v63 = vadd.f32 %v900_v18, %v808_v50  ;;  %v934_v52 = vadd.f32 %v902_v47, %v809_v54  ;;  %v1026_v6 = vrot.slane %v962_v55, 6  ;;  %v1148_v1 = vrot.slane %v1085_v17, 7 }
 0x11b   :  { %v1025_v57 = vsel %vm987_vm5, %v1023_v25, %v1024_v23  ;;  %v1488_v62 = vunpack.i.h.bf16 %v1486_v61  ;;  %v1149_v2 = vrot.slane %v1086_v33, 7  ;;  %v1151_v12 = vrot.slane %v1087_v28, 7 }
 0x11c   :  { %v1058_v0 = vadd.f32 %v1025_v57, %v933_v63  ;;  %v1487_v7 = vunpack.i.l.bf16 %v1486_v61  ;;  %v1027_v8 = vsel %vm987_vm5, %v1024_v23, %v1026_v6  ;;  %v335_v42 = vmul.f32 %v2366_v43, %v1611_v29 }
 0x11d   :  { %v1308_v45 = vmul.f32 %v1488_v62, %v1633_v41  ;;  %v460_v10 = vmul.f32 %v2366_v43, %v1613_v30  ;;  %v1059_v48 = vadd.f32 %v1027_v8, %v934_v52  ;;  %v1150_v11 = vsel %vm1112_vm6, %v1148_v1, %v1149_v2 }
 0x11e   :  { %v1152_v32 = vsel %vm1112_vm6, %v1149_v2, %v1151_v12  ;;  %v1307_v13 = vmul.f32 %v1487_v7, %v1633_v41  ;;  %v1422_v20 = vunpack.i.l.bf16 %v2367_v49  ;;  %v1183_v19 = vadd.f32 %v1150_v11, %v1058_v0 }
 0x11f   :  { %v585_v31 = vmul.f32 %v2366_v43, %v1619_v34  ;;  %v1184_v16 = vadd.f32 %v1152_v32, %v1059_v48  ;;  %v710_v4 = vmul.f32 %v2366_v43, %v1621_v35  ;;  %v2254_v51 = vmul.f32 %v2366_v43, %v1627_v38 }
 0x120   :  { %v2258_v14 = vmul.f32 %v2366_v43, %v1629_v39  ;;  %v1423_v24 = vunpack.i.h.bf16 %v2367_v49  ;;  %v1323_v37 = vadd.f32 %v1307_v13, %v1183_v19  ;;  %v397_v27 = vrot.slane %v335_v42, 1 }
 0x121   :  { %v1324_v56 = vadd.f32 %v1308_v45, %v1184_v16  ;;  %v522_v59 = vrot.slane %v460_v10, 2  ;;  %v647_v46 = vrot.slane %v585_v31, 3  ;;  %v2265_v58 = vmul.f32 %v2366_v43, %v1631_v40 }
 0x122   :  { %v1346_v15 = vadd.f32 %v1790_v3, %v1323_v37  ;;  %v771_v36 = vrot.slane %v710_v4, 4  ;;  %v896_v9 = vrot.slane %v2254_v51, 5  ;;  %v1483_v60 = vunpack.i.h.bf16 %v2260_v53 }
 0x123   :  { %v1347_v44 = vadd.f32 %v1790_v3, %v1324_v56  ;;  %v1021_v22 = vrot.slane %v2258_v14, 6  ;;  %v235_v5 = vmul.f32 %v1422_v20, %v1609_v26  ;;  %v333_v21 = vmul.f32 %v1422_v20, %v1611_v29 }
 0x124   :  { %v1362_v50 = vmax.f32 %v1346_v15, 0.0  ;;  %v334_v54 = vmul.f32 %v1423_v24, %v1611_v29  ;;  %v458_v18 = vmul.f32 %v1422_v20, %v1613_v30  ;;  %v459_v47 = vmul.f32 %v1423_v24, %v1613_v30 }
 0x125   :  { %v1363_v61 = vmax.f32 %v1347_v44, 0.0  ;;  %v394_v55 = vrot.slane %v333_v21, 1  ;;  %v583_v25 = vmul.f32 %v1422_v20, %v1619_v34  ;;  %v584_v23 = vmul.f32 %v1423_v24, %v1619_v34 }
 0x126   :  { %1379 = vst.msk [vmem:[%s2330_s3 + $0x70] sm:$0xff] %vm1364_vm7, %v1362_v50  ;;  %v395_v3 = vrot.slane %v334_v54, 1  ;;  %v519_v17 = vrot.slane %v458_v18, 2  ;;  %v520_v63 = vrot.slane %v459_v47, 2  ;;  %v708_v29 = vmul.f32 %v1422_v20, %v1621_v35  ;;  %v1489_v47 = vld [vmem:[%s2329_s2] ss:$0 sm:$0xff] }
 0x127   :  { %1380 = vst.msk [vmem:[%s2330_s3 + $0x78] sm:$0xff] %vm1364_vm7, %v1363_v61  ;;  %v236_v30 = vmul.f32 %v1423_v24, %v1609_v26  ;;  %v644_v52 = vrot.slane %v583_v25, 3  ;;  %v645_v33 = vrot.slane %v584_v23, 3  ;;  %v709_v34 = vmul.f32 %v1423_v24, %v1621_v35 }
 0x128   :  { %v396_v28 = vsel %vm363_vm1, %v394_v55, %v395_v3  ;;  %v398_v57 = vsel %vm363_vm1, %v395_v3, %v397_v27  ;;  %v523_v6 = vsel %vm488_vm2, %v520_v63, %v522_v59  ;;  %v832_v1 = vmul.f32 %v1422_v20, %v1627_v38 }
 0x129   :  { %v432_v62 = vadd.f32 %v396_v28, %v235_v5  ;;  %v433_v0 = vadd.f32 %v398_v57, %v236_v30  ;;  %v521_v2 = vsel %vm488_vm2, %v519_v17, %v520_v63  ;;  %v648_v12 = vsel %vm613_vm3, %v645_v33, %v647_v46 }
 0x12a   :  { %v646_v26 = vsel %vm613_vm3, %v644_v52, %v645_v33  ;;  %v768_v7 = vrot.slane %v708_v29, 4  ;;  %v769_v8 = vrot.slane %v709_v34, 4  ;;  %v833_v35 = vmul.f32 %v1423_v24, %v1627_v38 }
 0x12b   :  { %v557_v45 = vadd.f32 %v521_v2, %v432_v62  ;;  %v558_v43 = vadd.f32 %v523_v6, %v433_v0  ;;  %v957_v42 = vmul.f32 %v1422_v20, %v1629_v39  ;;  %v958_v10 = vmul.f32 %v1423_v24, %v1629_v39 }
 0x12c   :  { %v772_v48 = vsel %vm46_vm0, %v769_v8, %v771_v36  ;;  %v893_v11 = vrot.slane %v832_v1, 5  ;;  %v894_v32 = vrot.slane %v833_v35, 5  ;;  %v1082_v13 = vmul.f32 %v1422_v20, %v1631_v40 }
 0x12d   :  { %v1146_v49 = vrot.slane %v2265_v58, 7  ;;  %v682_v19 = vadd.f32 %v646_v26, %v557_v45  ;;  %v683_v31 = vadd.f32 %v648_v12, %v558_v43  ;;  %v1019_v16 = vrot.slane %v958_v10, 6 }
 0x12e   :  { %v770_v4 = vsel %vm46_vm0, %v768_v7, %v769_v8  ;;  %v897_v38 = vsel %vm862_vm4, %v894_v32, %v896_v9  ;;  %v1018_v51 = vrot.slane %v957_v42, 6  ;;  %v1083_v14 = vmul.f32 %v1423_v24, %v1631_v40 }
 0x12f   :  { %v1482_v39 = vunpack.i.l.bf16 %v2260_v53  ;;  %v806_v37 = vadd.f32 %v770_v4, %v682_v19  ;;  %v807_v27 = vadd.f32 %v772_v48, %v683_v31  ;;  %v1022_v56 = vsel %vm987_vm5, %v1019_v16, %v1021_v22 }
 0x130   :  { %v895_v20 = vsel %vm862_vm4, %v893_v11, %v894_v32  ;;  %v1143_v59 = vrot.slane %v1082_v13, 7  ;;  %v1144_v46 = vrot.slane %v1083_v14, 7  ;;  %v1020_v36 = vsel %vm987_vm5, %v1018_v51, %v1019_v16 }
 0x131   :  { %v931_v58 = vadd.f32 %v895_v20, %v806_v37  ;;  %v932_v15 = vadd.f32 %v897_v38, %v807_v27  ;;  %v1306_v40 = vmul.f32 %v1483_v60, %v1633_v41  ;;  %v1305_v5 = vmul.f32 %v1482_v39, %v1633_v41 }
 0x132   :  { %v1147_v44 = vsel %vm1112_vm6, %v1144_v46, %v1146_v49  ;;  %v1145_v22 = vsel %vm1112_vm6, %v1143_v59, %v1144_v46 }
 0x133   :  { %v1056_v24 = vadd.f32 %v1020_v36, %v931_v58  ;;  %v1057_v9 = vadd.f32 %v1022_v56, %v932_v15 }
 0x135   :  { %v1181_v21 = vadd.f32 %v1145_v22, %v1056_v24  ;;  %v1182_v50 = vadd.f32 %v1147_v44, %v1057_v9 }
 0x137   :  { %v1321_v54 = vadd.f32 %v1305_v5, %v1181_v21  ;;  %v1322_v18 = vadd.f32 %v1306_v40, %v1182_v50 }
 0x139   :  { %v1344_v61 = vadd.f32 %v1489_v47, %v1321_v54  ;;  %v1345_v55 = vadd.f32 %v1489_v47, %v1322_v18 }
 0x13b   :  { %v1360_v25 = vmax.f32 %v1344_v61, 0.0  ;;  %v1361_v23 = vmax.f32 %v1345_v55, 0.0 }
 0x13d   :  { %1377 = vst.msk [vmem:[%s2330_s3 + $0x60] sm:$0xff] %vm1364_vm7, %v1360_v25  ;;  %1378 = vst.msk [vmem:[%s2330_s3 + $0x68] sm:$0xff] %vm1364_vm7, %v1361_v23 }

</bundles_post_ra>
